<compile_context>
chip_gen: v6e
topology: v6e:2x2x1
jax: 0.10.0
libtpu: 0.0.40
codegen_flags: <defaults>
</compile_context>

<pallas_src>
import functools

import jax
import jax.numpy as jnp
from jax import lax
from jax.experimental import pallas as pl
from jax.experimental.pallas import tpu as pltpu

BN_EPS = 1e-5
BOARD = 19
C_IN = 256                # fixed by the torch module (conv in_channels)
P = BOARD * BOARD         # 361 spatial positions (fc1 in_features)
FC1_OUT = 256
TN_MAX = 32               # batch-tile rows (multiple of 8)


def _vmem_limit_bytes():
    """Per-generation scoped-VMEM limit (3/4 of physical, capped at 100 MiB)."""
    try:
        cap = int(pltpu.get_tpu_info().vmem_capacity_bytes)
    except Exception:
        cap = 64 * 1024 * 1024          # conservative (v7x-sized) fallback
    return min((cap * 3) // 4, 100 * 1024 * 1024)


# ---------------------------------------------------------------------------
# Fused two-phase kernel
# ---------------------------------------------------------------------------
def _value_head_kernel(x_ref, wc_ref, g_ref, be_ref, w1_ref, b1_ref,
                       w2_ref, b2_ref, o_ref, v_sc, sum_sc, ssq_sc,
                       *, tile_n, inv_count):
    # x_ref : (TN, 256, 361) bf16  -- one batch tile, NCHW with H*W flattened
    # wc_ref: (1, 256)       bf16  -- 1x1 conv weight (cout=1); bias dropped
    # g_ref, be_ref : (1, 1) f32   -- BN gamma / beta
    # w1_ref: (361, 256)     bf16  -- fc1 weight (transposed torch layout)
    # b1_ref: (1, 256)       f32
    # w2_ref: (1, 256)       f32   -- fc2 weight (torch row layout)
    # b2_ref: (1, 1)         f32
    # o_ref : (N_pad, 1)     f32   -- resident across the whole grid
    # v_sc  : (N_pad, 361)   f32   -- persistent conv-output scratch
    # sum_sc, ssq_sc: (1, 1) f32   -- running BN sum / sum-of-squares
    i = pl.program_id(0)
    last = pl.num_programs(0) - 1

    # ---- Phase 1 (every step): 1x1 conv (256 -> 1) for this batch tile.
    # Per-sample (1,256)@(256,361) MXU matvecs (bf16 in, f32 accumulate),
    # gathered into one lane-dense (TN, 361) tile -> single unmasked store.
    # The unroll is bounded by the tile size (<= 32), not the batch size.
    wc = wc_ref[...]
    rows = [jnp.dot(wc, x_ref[j], preferred_element_type=jnp.float32)
            for j in range(tile_n)]
    vt = jnp.concatenate(rows, axis=0)                        # (TN, 361) f32
    base = pl.multiple_of(i * tile_n, tile_n)
    v_sc[pl.ds(base, tile_n), :] = vt

    @pl.when(i == 0)
    def _():
        sum_sc[...] = jnp.zeros_like(sum_sc)
        ssq_sc[...] = jnp.zeros_like(ssq_sc)

    # Single-pass BN statistics.  Zero-padded batch rows contribute exactly 0
    # to both sums (x padded with zeros, no conv bias in-kernel).
    sum_sc[...] += jnp.sum(vt, keepdims=True)
    ssq_sc[...] += jnp.sum(vt * vt, keepdims=True)

    # ---- Phase 2 (last step): BN -> ReLU -> fc1 -> ReLU -> fc2 -> tanh.
    @pl.when(i == last)
    def _():
        mu = sum_sc[...] * inv_count                          # (1, 1)
        var = ssq_sc[...] * inv_count - mu * mu               # biased variance
        scale = g_ref[...] * lax.rsqrt(var + BN_EPS)
        shift = be_ref[...] - mu * scale
        v = jnp.maximum(v_sc[...] * scale + shift, 0.0)       # (N_pad, 361)
        # torch's x.view(-1, 19*19): with one channel this IS the (N, 361) v.
        h = jnp.dot(v.astype(jnp.bfloat16), w1_ref[...],
                    preferred_element_type=jnp.float32) + b1_ref[...]
        h = jnp.maximum(h, 0.0)                               # (N_pad, 256)
        # fc2 on VPU/XLU: lane-sum of h * w2 row (avoids a 1-lane MXU matmul).
        y = jnp.sum(h * w2_ref[...], axis=-1, keepdims=True) + b2_ref[...]
        o_ref[...] = jnp.tanh(y)                              # (N_pad, 1)


# ---------------------------------------------------------------------------
# Wrapper
# ---------------------------------------------------------------------------
def value_head_forward(params, x_nchw):
    """x_nchw: (N, 256, 19, 19) (PyTorch layout). Returns (N, 1) f32."""
    n = x_nchw.shape[0]
    tile_n = min(TN_MAX, ((n + 7) // 8) * 8)        # multiple of 8, <= 32
    n_pad = ((n + tile_n - 1) // tile_n) * tile_n
    num_tiles = n_pad // tile_n

    x = x_nchw.reshape(n, C_IN, P).astype(jnp.bfloat16)   # halve the HBM read
    if n_pad != n:
        x = jnp.pad(x, ((0, n_pad - n), (0, 0), (0, 0)))  # zero rows: BN-safe

    kernel = functools.partial(_value_head_kernel, tile_n=tile_n,
                               inv_count=1.0 / float(n * P))

    cost = pl.CostEstimate(
        flops=2 * n_pad * P * (C_IN + FC1_OUT) + 2 * n_pad * FC1_OUT,
        transcendentals=n_pad + 1,
        bytes_accessed=(x.size * 2 + (P + 2) * FC1_OUT * 2
                        + (C_IN + 2 * FC1_OUT + 4) * 4 + n_pad * 4),
    )

    out = pl.pallas_call(
        kernel,
        out_shape=jax.ShapeDtypeStruct((n_pad, 1), jnp.float32),
        grid=(num_tiles,),
        in_specs=[
            pl.BlockSpec((tile_n, C_IN, P), lambda i: (i, 0, 0)),  # x (tiled)
            pl.BlockSpec((1, C_IN), lambda i: (0, 0)),             # conv w (bf16)
            pl.BlockSpec((1, 1), lambda i: (0, 0)),                # bn gamma
            pl.BlockSpec((1, 1), lambda i: (0, 0)),                # bn beta
            pl.BlockSpec((P, FC1_OUT), lambda i: (0, 0)),          # fc1 w (bf16)
            pl.BlockSpec((1, FC1_OUT), lambda i: (0, 0)),          # fc1 b
            pl.BlockSpec((1, FC1_OUT), lambda i: (0, 0)),          # fc2 w (row)
            pl.BlockSpec((1, 1), lambda i: (0, 0)),                # fc2 b
        ],
        out_specs=pl.BlockSpec((n_pad, 1), lambda i: (0, 0)),
        scratch_shapes=[
            pltpu.VMEM((n_pad, P), jnp.float32),   # conv output (persistent)
            pltpu.VMEM((1, 1), jnp.float32),       # running sum
            pltpu.VMEM((1, 1), jnp.float32),       # running sum of squares
        ],
        compiler_params=pltpu.CompilerParams(
            dimension_semantics=("arbitrary",),
            vmem_limit_bytes=_vmem_limit_bytes(),
        ),
        cost_estimate=cost,
    )(x, params["conv_w"].astype(jnp.bfloat16), params["bn_gamma"],
      params["bn_beta"], params["fc1_w"], params["fc1_b"],
      params["fc2_w"], params["fc2_b"])
    return out[:n]


# ---------------------------------------------------------------------------
# Pure-JAX f32 reference (includes the conv bias to validate its cancellation)
# ---------------------------------------------------------------------------
def value_head_reference(params, x_nchw):
    n = x_nchw.shape[0]
    x = x_nchw.reshape(n, C_IN, P).astype(jnp.float32)
    v = jnp.einsum("ncp,c->np", x, params["conv_w"][0]) + params["conv_b"][0, 0]
    mu = jnp.mean(v)
    var = jnp.mean(jnp.square(v - mu))
    v = (params["bn_gamma"][0, 0] * (v - mu) * lax.rsqrt(var + BN_EPS)
         + params["bn_beta"][0, 0])
    v = jnp.maximum(v, 0.0)
    h = jnp.maximum(v @ params["fc1_w"].astype(jnp.float32) + params["fc1_b"], 0.0)
    return jnp.tanh(h @ params["fc2_w"].T + params["fc2_b"])


# ---------------------------------------------------------------------------
# Deterministic synthetic parameters (mirror the torch module's shapes)
# ---------------------------------------------------------------------------
def init_params(key):
    k = jax.random.split(key, 7)
    return {
        # torch Conv2d(256, 1, 1): weight (1, 256, 1, 1) -> stored as (1, 256)
        "conv_w": jax.random.normal(k[0], (1, C_IN), jnp.float32) / jnp.sqrt(C_IN),
        # conv bias kept for parameter fidelity; cancels under batch-stat BN
        "conv_b": 0.1 * jax.random.normal(k[1], (1, 1), jnp.float32),
        "bn_gamma": 1.0 + 0.1 * jax.random.normal(k[2], (1, 1), jnp.float32),
        "bn_beta": 0.1 * jax.random.normal(k[3], (1, 1), jnp.float32),
        # torch Linear fc1 weight is (256, 361); stored transposed (361, 256)
        "fc1_w": (jax.random.normal(k[4], (P, FC1_OUT), jnp.float32)
                  / jnp.sqrt(P)).astype(jnp.bfloat16),
        "fc1_b": 0.1 * jax.random.normal(k[5], (1, FC1_OUT), jnp.float32),
        # torch Linear fc2 weight is (1, 256) -- already a lane-dense row
        "fc2_w": jax.random.normal(k[6], (1, FC1_OUT), jnp.float32) / jnp.sqrt(FC1_OUT),
        "fc2_b": jnp.zeros((1, 1), jnp.float32),
    }


# ---------------------------------------------------------------------------
if __name__ == "__main__":
    key = jax.random.PRNGKey(0)
    pkey, xkey = jax.random.split(key)

    BATCH = 2   # channels (256) and spatial (19x19) are fixed by the module
    params = init_params(pkey)
    x = jax.random.normal(xkey, (BATCH, C_IN, BOARD, BOARD), jnp.float32)

    value = jax.jit(value_head_forward)(params, x)
    jax.block_until_ready(value)

    assert value.shape == (BATCH, 1), value.shape
    assert bool(jnp.all(jnp.isfinite(value)))
    assert bool(jnp.all(jnp.abs(value) <= 1.0))

    ref = value_head_reference(params, x)
    max_err = float(jnp.max(jnp.abs(value - ref)))
    assert max_err < 5e-2, f"mismatch vs reference: {max_err}"

    print("KERNEL_OK")
</pallas_src>

<mosaic_0001>
module attributes {stable_mosaic.version = 11 : i64} {
  func.func @_value_head_kernel(%arg0: i32, %arg1: memref<8x256x361xbf16, #tpu.memory_space<vmem>>, %arg2: memref<1x256xbf16, #tpu.memory_space<vmem>>, %arg3: memref<1x1xf32, #tpu.memory_space<vmem>>, %arg4: memref<1x1xf32, #tpu.memory_space<vmem>>, %arg5: memref<361x256xbf16, #tpu.memory_space<vmem>>, %arg6: memref<1x256xf32, #tpu.memory_space<vmem>>, %arg7: memref<1x256xf32, #tpu.memory_space<vmem>>, %arg8: memref<1x1xf32, #tpu.memory_space<vmem>>, %arg9: memref<8x1xf32, #tpu.memory_space<vmem>>, %arg10: memref<8x361xf32, #tpu.memory_space<vmem>>, %arg11: memref<1x1xf32, #tpu.memory_space<vmem>>, %arg12: memref<1x1xf32, #tpu.memory_space<vmem>>) attributes {dimension_semantics = [#tpu.dimension_semantics<arbitrary>], iteration_bounds = array<i64: 1>, scalar_prefetch = 0 : i64, scratch_operands = 3 : i64, tpu.core_type = #tpu.core_type<tc>, window_params = [{transform_indices = @transform_0, window_bounds = array<i64: 8, 256, 361>}, {pipeline_mode = #tpu.pipeline_mode<synchronous>, transform_indices = @transform_1, window_bounds = array<i64: 1, 256>}, {pipeline_mode = #tpu.pipeline_mode<synchronous>, transform_indices = @transform_2, window_bounds = array<i64: 1, 1>}, {pipeline_mode = #tpu.pipeline_mode<synchronous>, transform_indices = @transform_3, window_bounds = array<i64: 1, 1>}, {pipeline_mode = #tpu.pipeline_mode<synchronous>, transform_indices = @transform_4, window_bounds = array<i64: 361, 256>}, {pipeline_mode = #tpu.pipeline_mode<synchronous>, transform_indices = @transform_5, window_bounds = array<i64: 1, 256>}, {pipeline_mode = #tpu.pipeline_mode<synchronous>, transform_indices = @transform_6, window_bounds = array<i64: 1, 256>}, {pipeline_mode = #tpu.pipeline_mode<synchronous>, transform_indices = @transform_7, window_bounds = array<i64: 1, 1>}, {pipeline_mode = #tpu.pipeline_mode<synchronous>, transform_indices = @transform_8, window_bounds = array<i64: 8, 1>}]} {
    %c0 = arith.constant 0 : index
    %c0_0 = arith.constant 0 : index
    %0 = vector.load %arg2[%c0, %c0_0] : memref<1x256xbf16, #tpu.memory_space<vmem>>, vector<1x256xbf16>
    %c0_1 = arith.constant 0 : index
    %c0_2 = arith.constant 0 : index
    %c0_3 = arith.constant 0 : index
    %1 = vector.load %arg1[%c0_1, %c0_2, %c0_3] : memref<8x256x361xbf16, #tpu.memory_space<vmem>>, vector<1x256x361xbf16>
    %2 = vector.shape_cast %1 : vector<1x256x361xbf16> to vector<256x361xbf16>
    %cst = arith.constant dense<0.000000e+00> : vector<1x361xf32>
    %3 = tpu.matmul %0, %2, %cst {dimension_numbers = #tpu.dot_dimension_numbers<[1], [0], [0], [1], [0, 0, 1, 1], [], []>} : vector<1x256xbf16>, vector<256x361xbf16>, vector<1x361xf32> -> vector<1x361xf32>
    %c1 = arith.constant 1 : index
    %c0_4 = arith.constant 0 : index
    %c0_5 = arith.constant 0 : index
    %4 = vector.load %arg1[%c1, %c0_4, %c0_5] : memref<8x256x361xbf16, #tpu.memory_space<vmem>>, vector<1x256x361xbf16>
    %5 = vector.shape_cast %4 : vector<1x256x361xbf16> to vector<256x361xbf16>
    %cst_6 = arith.constant dense<0.000000e+00> : vector<1x361xf32>
    %6 = tpu.matmul %0, %5, %cst_6 {dimension_numbers = #tpu.dot_dimension_numbers<[1], [0], [0], [1], [0, 0, 1, 1], [], []>} : vector<1x256xbf16>, vector<256x361xbf16>, vector<1x361xf32> -> vector<1x361xf32>
    %c2 = arith.constant 2 : index
    %c0_7 = arith.constant 0 : index
    %c0_8 = arith.constant 0 : index
    %7 = vector.load %arg1[%c2, %c0_7, %c0_8] : memref<8x256x361xbf16, #tpu.memory_space<vmem>>, vector<1x256x361xbf16>
    %8 = vector.shape_cast %7 : vector<1x256x361xbf16> to vector<256x361xbf16>
    %cst_9 = arith.constant dense<0.000000e+00> : vector<1x361xf32>
    %9 = tpu.matmul %0, %8, %cst_9 {dimension_numbers = #tpu.dot_dimension_numbers<[1], [0], [0], [1], [0, 0, 1, 1], [], []>} : vector<1x256xbf16>, vector<256x361xbf16>, vector<1x361xf32> -> vector<1x361xf32>
    %c3 = arith.constant 3 : index
    %c0_10 = arith.constant 0 : index
    %c0_11 = arith.constant 0 : index
    %10 = vector.load %arg1[%c3, %c0_10, %c0_11] : memref<8x256x361xbf16, #tpu.memory_space<vmem>>, vector<1x256x361xbf16>
    %11 = vector.shape_cast %10 : vector<1x256x361xbf16> to vector<256x361xbf16>
    %cst_12 = arith.constant dense<0.000000e+00> : vector<1x361xf32>
    %12 = tpu.matmul %0, %11, %cst_12 {dimension_numbers = #tpu.dot_dimension_numbers<[1], [0], [0], [1], [0, 0, 1, 1], [], []>} : vector<1x256xbf16>, vector<256x361xbf16>, vector<1x361xf32> -> vector<1x361xf32>
    %c4 = arith.constant 4 : index
    %c0_13 = arith.constant 0 : index
    %c0_14 = arith.constant 0 : index
    %13 = vector.load %arg1[%c4, %c0_13, %c0_14] : memref<8x256x361xbf16, #tpu.memory_space<vmem>>, vector<1x256x361xbf16>
    %14 = vector.shape_cast %13 : vector<1x256x361xbf16> to vector<256x361xbf16>
    %cst_15 = arith.constant dense<0.000000e+00> : vector<1x361xf32>
    %15 = tpu.matmul %0, %14, %cst_15 {dimension_numbers = #tpu.dot_dimension_numbers<[1], [0], [0], [1], [0, 0, 1, 1], [], []>} : vector<1x256xbf16>, vector<256x361xbf16>, vector<1x361xf32> -> vector<1x361xf32>
    %c5 = arith.constant 5 : index
    %c0_16 = arith.constant 0 : index
    %c0_17 = arith.constant 0 : index
    %16 = vector.load %arg1[%c5, %c0_16, %c0_17] : memref<8x256x361xbf16, #tpu.memory_space<vmem>>, vector<1x256x361xbf16>
    %17 = vector.shape_cast %16 : vector<1x256x361xbf16> to vector<256x361xbf16>
    %cst_18 = arith.constant dense<0.000000e+00> : vector<1x361xf32>
    %18 = tpu.matmul %0, %17, %cst_18 {dimension_numbers = #tpu.dot_dimension_numbers<[1], [0], [0], [1], [0, 0, 1, 1], [], []>} : vector<1x256xbf16>, vector<256x361xbf16>, vector<1x361xf32> -> vector<1x361xf32>
    %c6 = arith.constant 6 : index
    %c0_19 = arith.constant 0 : index
    %c0_20 = arith.constant 0 : index
    %19 = vector.load %arg1[%c6, %c0_19, %c0_20] : memref<8x256x361xbf16, #tpu.memory_space<vmem>>, vector<1x256x361xbf16>
    %20 = vector.shape_cast %19 : vector<1x256x361xbf16> to vector<256x361xbf16>
    %cst_21 = arith.constant dense<0.000000e+00> : vector<1x361xf32>
    %21 = tpu.matmul %0, %20, %cst_21 {dimension_numbers = #tpu.dot_dimension_numbers<[1], [0], [0], [1], [0, 0, 1, 1], [], []>} : vector<1x256xbf16>, vector<256x361xbf16>, vector<1x361xf32> -> vector<1x361xf32>
    %c7 = arith.constant 7 : index
    %c0_22 = arith.constant 0 : index
    %c0_23 = arith.constant 0 : index
    %22 = vector.load %arg1[%c7, %c0_22, %c0_23] : memref<8x256x361xbf16, #tpu.memory_space<vmem>>, vector<1x256x361xbf16>
    %23 = vector.shape_cast %22 : vector<1x256x361xbf16> to vector<256x361xbf16>
    %cst_24 = arith.constant dense<0.000000e+00> : vector<1x361xf32>
    %24 = tpu.matmul %0, %23, %cst_24 {dimension_numbers = #tpu.dot_dimension_numbers<[1], [0], [0], [1], [0, 0, 1, 1], [], []>} : vector<1x256xbf16>, vector<256x361xbf16>, vector<1x361xf32> -> vector<1x361xf32>
    %25 = tpu.concatenate %3, %6, %9, %12, %15, %18, %21, %24 in 0 : vector<1x361xf32>, vector<1x361xf32>, vector<1x361xf32>, vector<1x361xf32>, vector<1x361xf32>, vector<1x361xf32>, vector<1x361xf32>, vector<1x361xf32> -> vector<8x361xf32>
    %c8_i32 = arith.constant 8 : i32
    %26 = arith.muli %arg0, %c8_i32 : i32
    %27 = tpu.assume_multiple %26, 8 : i32
    %28 = arith.index_cast %27 : i32 to index
    %c0_25 = arith.constant 0 : index
    %29 = vector.load %arg10[%28, %c0_25] : memref<8x361xf32, #tpu.memory_space<vmem>>, vector<8x361xf32>
    tpu.vector_store %arg10[%28, %c0_25], %25 {strides = array<i32>} : memref<8x361xf32, #tpu.memory_space<vmem>>, vector<8x361xf32>,
    %c0_i32 = arith.constant 0 : i32
    %30 = arith.cmpi eq, %arg0, %c0_i32 : i32
    %31 = arith.extui %30 : i1 to i32
    %c0_i32_26 = arith.constant 0 : i32
    %32 = arith.cmpi ne, %31, %c0_i32_26 : i32
    scf.if %32 {
      %cst_39 = arith.constant 0.000000e+00 : f32
      %53 = vector.broadcast %cst_39 : f32 to vector<1x1xf32>
      %c0_40 = arith.constant 0 : index
      %c0_41 = arith.constant 0 : index
      %54 = vector.load %arg11[%c0_40, %c0_41] : memref<1x1xf32, #tpu.memory_space<vmem>>, vector<1x1xf32>
      tpu.vector_store %arg11[%c0_40, %c0_41], %53 {strides = array<i32>} : memref<1x1xf32, #tpu.memory_space<vmem>>, vector<1x1xf32>,
      %cst_42 = arith.constant 0.000000e+00 : f32
      %55 = vector.broadcast %cst_42 : f32 to vector<1x1xf32>
      %c0_43 = arith.constant 0 : index
      %c0_44 = arith.constant 0 : index
      %56 = vector.load %arg12[%c0_43, %c0_44] : memref<1x1xf32, #tpu.memory_space<vmem>>, vector<1x1xf32>
      tpu.vector_store %arg12[%c0_43, %c0_44], %55 {strides = array<i32>} : memref<1x1xf32, #tpu.memory_space<vmem>>, vector<1x1xf32>,
    } else {
    }
    %c0_27 = arith.constant 0 : index
    %c0_28 = arith.constant 0 : index
    %33 = vector.load %arg11[%c0_27, %c0_28] : memref<1x1xf32, #tpu.memory_space<vmem>>, vector<1x1xf32>
    %34 = vector.shape_cast %25 : vector<8x361xf32> to vector<1x8x361xf32>
    %cst_29 = arith.constant dense<0.000000e+00> : vector<1xf32>
    %35 = vector.multi_reduction <add>, %34, %cst_29 [1, 2] : vector<1x8x361xf32> to vector<1xf32>
    %36 = vector.shape_cast %35 : vector<1xf32> to vector<1x1x1xf32>
    %37 = vector.extract %36[0, 0, 0] : f32 from vector<1x1x1xf32>
    %38 = vector.broadcast %37 : f32 to vector<1x1xf32>
    %39 = arith.addf %33, %38 : vector<1x1xf32>
    %c0_30 = arith.constant 0 : index
    %c0_31 = arith.constant 0 : index
    %40 = vector.load %arg11[%c0_30, %c0_31] : memref<1x1xf32, #tpu.memory_space<vmem>>, vector<1x1xf32>
    tpu.vector_store %arg11[%c0_30, %c0_31], %39 {strides = array<i32>} : memref<1x1xf32, #tpu.memory_space<vmem>>, vector<1x1xf32>,
    %c0_32 = arith.constant 0 : index
    %c0_33 = arith.constant 0 : index
    %41 = vector.load %arg12[%c0_32, %c0_33] : memref<1x1xf32, #tpu.memory_space<vmem>>, vector<1x1xf32>
    %42 = arith.mulf %25, %25 : vector<8x361xf32>
    %43 = vector.shape_cast %42 : vector<8x361xf32> to vector<1x8x361xf32>
    %cst_34 = arith.constant dense<0.000000e+00> : vector<1xf32>
    %44 = vector.multi_reduction <add>, %43, %cst_34 [1, 2] : vector<1x8x361xf32> to vector<1xf32>
    %45 = vector.shape_cast %44 : vector<1xf32> to vector<1x1x1xf32>
    %46 = vector.extract %45[0, 0, 0] : f32 from vector<1x1x1xf32>
    %47 = vector.broadcast %46 : f32 to vector<1x1xf32>
    %48 = arith.addf %41, %47 : vector<1x1xf32>
    %c0_35 = arith.constant 0 : index
    %c0_36 = arith.constant 0 : index
    %49 = vector.load %arg12[%c0_35, %c0_36] : memref<1x1xf32, #tpu.memory_space<vmem>>, vector<1x1xf32>
    tpu.vector_store %arg12[%c0_35, %c0_36], %48 {strides = array<i32>} : memref<1x1xf32, #tpu.memory_space<vmem>>, vector<1x1xf32>,
    %c0_i32_37 = arith.constant 0 : i32
    %50 = arith.cmpi eq, %arg0, %c0_i32_37 : i32
    %51 = arith.extui %50 : i1 to i32
    %c0_i32_38 = arith.constant 0 : i32
    %52 = arith.cmpi ne, %51, %c0_i32_38 : i32
    scf.if %52 {
      %c0_39 = arith.constant 0 : index
      %c0_40 = arith.constant 0 : index
      %53 = vector.load %arg11[%c0_39, %c0_40] : memref<1x1xf32, #tpu.memory_space<vmem>>, vector<1x1xf32>
      %cst_41 = arith.constant 0.00138504151 : f32
      %54 = vector.broadcast %cst_41 : f32 to vector<1x1xf32>
      %55 = arith.mulf %53, %54 : vector<1x1xf32>
      %c0_42 = arith.constant 0 : index
      %c0_43 = arith.constant 0 : index
      %56 = vector.load %arg12[%c0_42, %c0_43] : memref<1x1xf32, #tpu.memory_space<vmem>>, vector<1x1xf32>
      %cst_44 = arith.constant 0.00138504151 : f32
      %57 = vector.broadcast %cst_44 : f32 to vector<1x1xf32>
      %58 = arith.mulf %56, %57 : vector<1x1xf32>
      %59 = arith.mulf %55, %55 : vector<1x1xf32>
      %60 = arith.subf %58, %59 : vector<1x1xf32>
      %c0_45 = arith.constant 0 : index
      %c0_46 = arith.constant 0 : index
      %61 = vector.load %arg3[%c0_45, %c0_46] : memref<1x1xf32, #tpu.memory_space<vmem>>, vector<1x1xf32>
      %cst_47 = arith.constant 9.99999974E-6 : f32
      %62 = vector.broadcast %cst_47 : f32 to vector<1x1xf32>
      %63 = arith.addf %60, %62 : vector<1x1xf32>
      %64 = math.rsqrt %63 : vector<1x1xf32>
      %65 = arith.mulf %61, %64 : vector<1x1xf32>
      %c0_48 = arith.constant 0 : index
      %c0_49 = arith.constant 0 : index
      %66 = vector.load %arg4[%c0_48, %c0_49] : memref<1x1xf32, #tpu.memory_space<vmem>>, vector<1x1xf32>
      %67 = arith.mulf %55, %65 : vector<1x1xf32>
      %68 = arith.subf %66, %67 : vector<1x1xf32>
      %c0_50 = arith.constant 0 : index
      %c0_51 = arith.constant 0 : index
      %69 = vector.load %arg10[%c0_50, %c0_51] : memref<8x361xf32, #tpu.memory_space<vmem>>, vector<8x361xf32>
      %70 = vector.broadcast %65 : vector<1x1xf32> to vector<8x361xf32>
      %71 = arith.mulf %69, %70 : vector<8x361xf32>
      %72 = vector.broadcast %68 : vector<1x1xf32> to vector<8x361xf32>
      %73 = arith.addf %71, %72 : vector<8x361xf32>
      %cst_52 = arith.constant 0.000000e+00 : f32
      %74 = vector.broadcast %cst_52 : f32 to vector<8x361xf32>
      %75 = arith.maximumf %73, %74 : vector<8x361xf32>
      %76 = arith.truncf %75 : vector<8x361xf32> to vector<8x361xbf16>
      %c0_53 = arith.constant 0 : index
      %c0_54 = arith.constant 0 : index
      %77 = vector.load %arg5[%c0_53, %c0_54] : memref<361x256xbf16, #tpu.memory_space<vmem>>, vector<361x256xbf16>
      %cst_55 = arith.constant dense<0.000000e+00> : vector<8x256xf32>
      %78 = tpu.matmul %76, %77, %cst_55 {dimension_numbers = #tpu.dot_dimension_numbers<[1], [0], [0], [1], [0, 0, 1, 1], [], []>} : vector<8x361xbf16>, vector<361x256xbf16>, vector<8x256xf32> -> vector<8x256xf32>
      %c0_56 = arith.constant 0 : index
      %c0_57 = arith.constant 0 : index
      %79 = vector.load %arg6[%c0_56, %c0_57] : memref<1x256xf32, #tpu.memory_space<vmem>>, vector<1x256xf32>
      %80 = vector.broadcast %79 : vector<1x256xf32> to vector<8x256xf32>
      %81 = arith.addf %78, %80 : vector<8x256xf32>
      %cst_58 = arith.constant 0.000000e+00 : f32
      %82 = vector.broadcast %cst_58 : f32 to vector<8x256xf32>
      %83 = arith.maximumf %81, %82 : vector<8x256xf32>
      %c0_59 = arith.constant 0 : index
      %c0_60 = arith.constant 0 : index
      %84 = vector.load %arg7[%c0_59, %c0_60] : memref<1x256xf32, #tpu.memory_space<vmem>>, vector<1x256xf32>
      %85 = vector.broadcast %84 : vector<1x256xf32> to vector<8x256xf32>
      %86 = arith.mulf %83, %85 : vector<8x256xf32>
      %cst_61 = arith.constant dense<0.000000e+00> : vector<8xf32>
      %87 = vector.multi_reduction <add>, %86, %cst_61 [1] : vector<8x256xf32> to vector<8xf32>
      %88 = vector.shape_cast %87 : vector<8xf32> to vector<8x1xf32>
      %c0_62 = arith.constant 0 : index
      %c0_63 = arith.constant 0 : index
      %89 = vector.load %arg8[%c0_62, %c0_63] : memref<1x1xf32, #tpu.memory_space<vmem>>, vector<1x1xf32>
      %90 = vector.broadcast %89 : vector<1x1xf32> to vector<8x1xf32>
      %91 = arith.addf %88, %90 : vector<8x1xf32>
      %92 = math.tanh %91 : vector<8x1xf32>
      %c0_64 = arith.constant 0 : index
      %c0_65 = arith.constant 0 : index
      %93 = vector.load %arg9[%c0_64, %c0_65] : memref<8x1xf32, #tpu.memory_space<vmem>>, vector<8x1xf32>
      tpu.vector_store %arg9[%c0_64, %c0_65], %92 {strides = array<i32>} : memref<8x1xf32, #tpu.memory_space<vmem>>, vector<8x1xf32>,
    } else {
    }
    return
  }
  func.func @transform_0(%arg0: i32) -> (i32, i32, i32) {
    %c0_i32 = arith.constant 0 : i32
    %c0_i32_0 = arith.constant 0 : i32
    %c0_i32_1 = arith.constant 0 : i32
    return %arg0, %c0_i32, %c0_i32_0 : i32, i32, i32
  }
  func.func @transform_1(%arg0: i32) -> (i32, i32) {
    %c0_i32 = arith.constant 0 : i32
    %c0_i32_0 = arith.constant 0 : i32
    %c0_i32_1 = arith.constant 0 : i32
    return %c0_i32, %c0_i32_0 : i32, i32
  }
  func.func @transform_2(%arg0: i32) -> (i32, i32) {
    %c0_i32 = arith.constant 0 : i32
    %c0_i32_0 = arith.constant 0 : i32
    %c0_i32_1 = arith.constant 0 : i32
    return %c0_i32, %c0_i32_0 : i32, i32
  }
  func.func @transform_3(%arg0: i32) -> (i32, i32) {
    %c0_i32 = arith.constant 0 : i32
    %c0_i32_0 = arith.constant 0 : i32
    %c0_i32_1 = arith.constant 0 : i32
    return %c0_i32, %c0_i32_0 : i32, i32
  }
  func.func @transform_4(%arg0: i32) -> (i32, i32) {
    %c0_i32 = arith.constant 0 : i32
    %c0_i32_0 = arith.constant 0 : i32
    %c0_i32_1 = arith.constant 0 : i32
    return %c0_i32, %c0_i32_0 : i32, i32
  }
  func.func @transform_5(%arg0: i32) -> (i32, i32) {
    %c0_i32 = arith.constant 0 : i32
    %c0_i32_0 = arith.constant 0 : i32
    %c0_i32_1 = arith.constant 0 : i32
    return %c0_i32, %c0_i32_0 : i32, i32
  }
  func.func @transform_6(%arg0: i32) -> (i32, i32) {
    %c0_i32 = arith.constant 0 : i32
    %c0_i32_0 = arith.constant 0 : i32
    %c0_i32_1 = arith.constant 0 : i32
    return %c0_i32, %c0_i32_0 : i32, i32
  }
  func.func @transform_7(%arg0: i32) -> (i32, i32) {
    %c0_i32 = arith.constant 0 : i32
    %c0_i32_0 = arith.constant 0 : i32
    %c0_i32_1 = arith.constant 0 : i32
    return %c0_i32, %c0_i32_0 : i32, i32
  }
  func.func @transform_8(%arg0: i32) -> (i32, i32) {
    %c0_i32 = arith.constant 0 : i32
    %c0_i32_0 = arith.constant 0 : i32
    %c0_i32_1 = arith.constant 0 : i32
    return %c0_i32, %c0_i32_0 : i32, i32
  }
}

</mosaic_0001>

<bundles_post_ra>
// kernel: value_head_forward.1
= control target key start
LH: loop header
LB: loop body
LE: loop exit
PB: predicated region body
PF: predicated region fallthrough
CT: control target
= control target key end

     0   :  { %v113_v20 = vlaneseq  ;;  %v5537_v23 = vmov 1966171168   ;;  %vm3340_vm0 = vcmask 1040384   ;;  %vm3344_vm1 = vcmask 1041408   ;;  %s7011_s0 = inlined_call_operand.vmem [shape: bf16[8,256,361], index: 0, kind: input, shape index: {}]   ;;  %s7012_s1 = inlined_call_operand.vmem [shape: bf16[1,256], index: 1, kind: input, shape index: {}]   ;;  %s7013_s2 = inlined_call_operand.<no memory space> [shape: f32[1,1], index: 2, kind: input, shape index: {}]   ;;  %s7014_s3 = inlined_call_operand.<no memory space> [shape: f32[1,1], index: 3, kind: input, shape index: {}]   ;;  %s7015_s4 = inlined_call_operand.vmem [shape: bf16[361,256], index: 4, kind: input, shape index: {}]   ;;  %s7016_s7 = inlined_call_operand.<no memory space> [shape: f32[1,1], index: 7, kind: input, shape index: {}]   ;;  %s7017_s5 = inlined_call_operand.vmem [shape: f32[1,256], index: 5, kind: input, shape index: {}]   ;;  %s7018_s6 = inlined_call_operand.vmem [shape: f32[1,256], index: 6, kind: input, shape index: {}]   ;;  %s7019_s8 = inlined_call_operand.vmem [shape: f32[8,1], index: 8, kind: output, shape index: {}]  }
   0x1   :  { %v4952_v0 = vld [vmem:[%s7011_s0 + $0xac] ss:$12 sps:$4 sm:$0xff]   ;;  %v4954_v1 = vld [vmem:[%s7011_s0 + $0x170] ss:$12 sps:$4 sm:$0xff]   ;;  %v4955_v2 = vld [vmem:[%s7011_s0 + $0xa8] ss:$12 sps:$4 sm:$0xff]   ;;  %v111_v24 = vunpack.c.l.s4 %v5537_v23 }
   0x2   :  { %382 = vmatprep.subr.bf16.mxu0 %v4952_v0  ;;  %4766 = vmatprep.subr.bf16.mxu1 %v4954_v1  ;;  %v4956_v3 = vld [vmem:[%s7011_s0 + $0xb0] ss:$12 sps:$4 sm:$0xff]   ;;  %v4957_v4 = vld [vmem:[%s7011_s0 + $0x94] ss:$12 sps:$4 sm:$0xff]   ;;  %v4959_v5 = vld [vmem:[%s7011_s0 + $0x158] ss:$12 sps:$4 sm:$0xff]  }
   0x3   :  { %383 = vmatpush1.bf16.msra.mxu0 %v4955_v2  ;;  %4767 = vmatpush3.bf16.msra.mxu1 %v4956_v3  ;;  %v4960_v6 = vld [vmem:[%s7011_s0 + $0x90] ss:$12 sps:$4 sm:$0xff]   ;;  %v4961_v7 = vld [vmem:[%s7011_s0 + $0x98] ss:$12 sps:$4 sm:$0xff]   ;;  %v4964_v9 = vld [vmem:[%s7011_s0 + $0x140] ss:$12 sps:$4 sm:$0xff]   ;;  %v112_v30 = vunpack.c.0.s8 %v111_v24 }
   0x4   :  { %384 = vmatprep.subr.bf16.mxu0 %v4957_v4  ;;  %4768 = vmatprep.subr.bf16.mxu1 %v4959_v5  ;;  %v4962_v8 = vld [vmem:[%s7011_s0 + $0x7c] ss:$12 sps:$4 sm:$0xff]   ;;  %v4965_v10 = vld [vmem:[%s7011_s0 + $0x78] ss:$12 sps:$4 sm:$0xff]   ;;  %v4966_v11 = vld [vmem:[%s7011_s0 + $0x80] ss:$12 sps:$4 sm:$0xff]  }
   0x5   :  { %v4967_v12 = vld [vmem:[%s7011_s0 + $0x64] ss:$12 sps:$4 sm:$0xff]   ;;  %v4969_v13 = vld [vmem:[%s7011_s0 + $0x128] ss:$12 sps:$4 sm:$0xff]   ;;  %v4970_v14 = vld [vmem:[%s7011_s0 + $0x60] ss:$12 sps:$4 sm:$0xff]  }
   0x6   :  { %v4971_v15 = vld [vmem:[%s7011_s0 + $0x68] ss:$12 sps:$4 sm:$0xff]   ;;  %v4972_v16 = vld [vmem:[%s7011_s0 + $0x4c] ss:$12 sps:$4 sm:$0xff]   ;;  %v4974_v17 = vld [vmem:[%s7011_s0 + $0x110] ss:$12 sps:$4 sm:$0xff]  }
   0x7   :  { %385 = vmatpush1.bf16.msra.mxu0 %v4960_v6  ;;  %4769 = vmatpush3.bf16.msra.mxu1 %v4961_v7  ;;  %v4975_v18 = vld [vmem:[%s7011_s0 + $0x48] ss:$12 sps:$4 sm:$0xff]   ;;  %v4976_v19 = vld [vmem:[%s7011_s0 + $0x50] ss:$12 sps:$4 sm:$0xff]   ;;  %v4979_v22 = vld [vmem:[%s7011_s0 + $0xf8] ss:$12 sps:$4 sm:$0xff]  }
   0x8   :  { %386 = vmatprep.subr.bf16.mxu0 %v4962_v8  ;;  %4770 = vmatprep.subr.bf16.mxu1 %v4964_v9  ;;  %v4977_v21 = vld [vmem:[%s7011_s0 + $0x34] ss:$12 sps:$4 sm:$0xff]   ;;  %v4980_v25 = vld [vmem:[%s7011_s0 + $0x30] ss:$12 sps:$4 sm:$0xff]   ;;  %v4981_v26 = vld [vmem:[%s7011_s0 + $0x38] ss:$12 sps:$4 sm:$0xff]  }
   0x9   :  { %v5658_v27 = vshrl.u32 %v113_v20, 7  ;;  %v4982_v28 = vld [vmem:[%s7011_s0 + $0x1c] ss:$12 sps:$4 sm:$0xff]   ;;  %v4984_v29 = vld [vmem:[%s7011_s0 + $0xe0] ss:$12 sps:$4 sm:$0xff]   ;;  %vm3348_vm2 = vcmask 1042432  }
   0xa   :  { %v4985_v31 = vld [vmem:[%s7011_s0 + $0x18] ss:$12 sps:$4 sm:$0xff]   ;;  %v4986_v32 = vld [vmem:[%s7011_s0 + $0x20] ss:$12 sps:$4 sm:$0xff]   ;;  %v4989_v34 = vld [vmem:[%s7011_s0 + $0xc8] ss:$12 sps:$4 sm:$0xff]  }
   0xb   :  { %387 = vmatpush1.bf16.msra.mxu0 %v4965_v10  ;;  %4771 = vmatpush3.bf16.msra.mxu1 %v4966_v11  ;;  %v4987_v33 = vld [vmem:[%s7011_s0 + $0x4] ss:$12 sps:$4 sm:$0xff]   ;;  %v115_v35 = vsub.s32 %v112_v30, %v5658_v27  ;;  %v3885_v36 = vld.sshfl [vmem:[%s7012_s1] sm:$0x11 pattern:$0x75316420] }
   0xc   :  { %388 = vmatprep.subr.bf16.mxu0 %v4967_v12  ;;  %4772 = vmatprep.subr.bf16.mxu1 %v4969_v13  ;;  %v4990_v37 = vld [vmem:[%s7011_s0] ss:$12 sps:$4 sm:$0xff]   ;;  %v109_v38 = vcombine.high %v3885_v36, %v3885_v36  ;;  %v4991_v39 = vld [vmem:[%s7011_s0 + $0x8] ss:$12 sps:$4 sm:$0xff]   ;;  %v5003_v48 = vld [vmem:[%s7011_s0 + $0x150] ss:$12 sps:$4 sm:$0xff]  }
   0xd   :  { %v4992_v40 = vld [vmem:[%s7011_s0 + $0x16c] ss:$12 sps:$4 sm:$0xff]   ;;  %v4994_v43 = vld [vmem:[%s7011_s0 + $0x228] ss:$12 sps:$4 sm:$0xff]   ;;  %v5700_v44 = vrot.slane %v3885_v36, %v115_v35  ;;  %v5000_v49 = vld [vmem:[%s7011_s0 + $0x210] ss:$12 sps:$4 sm:$0xff]  }
   0xe   :  { %v5691_v41 = vrot.slane %v109_v38, %v115_v35  ;;  %v4996_v42 = vld [vmem:[%s7011_s0 + $0x22c] ss:$12 sps:$4 sm:$0xff]   ;;  %v4997_v45 = vld [vmem:[%s7011_s0 + $0x168] ss:$12 sps:$4 sm:$0xff]   ;;  %v5010_v54 = vld [vmem:[%s7011_s0 + $0x124] ss:$12 sps:$4 sm:$0xff]  }
   0xf   :  { %389 = vmatpush1.bf16.msra.mxu0 %v4970_v14  ;;  %4773 = vmatpush3.bf16.msra.mxu1 %v4971_v15  ;;  %v4998_v46 = vld [vmem:[%s7011_s0 + $0x154] ss:$12 sps:$4 sm:$0xff]   ;;  %v5004_v50 = vld [vmem:[%s7011_s0 + $0x13c] ss:$12 sps:$4 sm:$0xff]   ;;  %v5006_v52 = vld [vmem:[%s7011_s0 + $0x1f8] ss:$12 sps:$4 sm:$0xff]  }
  0x10   :  { %390 = vmatprep.subr.bf16.mxu0 %v4972_v16  ;;  %4774 = vmatprep.subr.bf16.mxu1 %v4974_v17  ;;  %v5002_v47 = vld [vmem:[%s7011_s0 + $0x214] ss:$12 sps:$4 sm:$0xff]   ;;  %v5008_v51 = vld [vmem:[%s7011_s0 + $0x1fc] ss:$12 sps:$4 sm:$0xff]   ;;  %v5009_v53 = vld [vmem:[%s7011_s0 + $0x138] ss:$12 sps:$4 sm:$0xff]  }
  0x11   :  { %455 = vmatprep.mubr.bf16.mxu1 %v5691_v41  ;;  %414 = vmatprep.mubr.bf16.mxu0 %v5691_v41  ;;  %v5014_v55 = vld [vmem:[%s7011_s0 + $0x1e4] ss:$12 sps:$4 sm:$0xff]   ;;  %v5015_v56 = vld [vmem:[%s7011_s0 + $0x120] ss:$12 sps:$4 sm:$0xff]   ;;  %v5021_v60 = vld [vmem:[%s7011_s0 + $0x108] ss:$12 sps:$4 sm:$0xff]  }
  0x12   :  { %v5012_v57 = vld [vmem:[%s7011_s0 + $0x1e0] ss:$12 sps:$4 sm:$0xff]   ;;  %v5018_v61 = vld [vmem:[%s7011_s0 + $0x1c8] ss:$12 sps:$4 sm:$0xff]   ;;  %v5027_v0 = vld [vmem:[%s7011_s0 + $0xf0] ss:$12 sps:$4 sm:$0xff]  }
  0x13   :  { %391 = vmatpush1.bf16.msra.mxu0 %v4975_v18  ;;  %4775 = vmatpush3.bf16.msra.mxu1 %v4976_v19  ;;  %v5016_v58 = vld [vmem:[%s7011_s0 + $0x10c] ss:$12 sps:$4 sm:$0xff]   ;;  %v5022_v62 = vld [vmem:[%s7011_s0 + $0xf4] ss:$12 sps:$4 sm:$0xff]   ;;  %v5024_v1 = vld [vmem:[%s7011_s0 + $0x1b0] ss:$12 sps:$4 sm:$0xff]  }
  0x14   :  { %392 = vmatprep.subr.bf16.mxu0 %v4977_v21  ;;  %4776 = vmatprep.subr.bf16.mxu1 %v4979_v22  ;;  %v5020_v59 = vld [vmem:[%s7011_s0 + $0x1cc] ss:$12 sps:$4 sm:$0xff]   ;;  %v5026_v63 = vld [vmem:[%s7011_s0 + $0x1b4] ss:$12 sps:$4 sm:$0xff]   ;;  %v5028_v2 = vld [vmem:[%s7011_s0 + $0xdc] ss:$12 sps:$4 sm:$0xff]  }
  0x15   :  { %v5032_v3 = vld [vmem:[%s7011_s0 + $0x19c] ss:$12 sps:$4 sm:$0xff]   ;;  %v5033_v4 = vld [vmem:[%s7011_s0 + $0xd8] ss:$12 sps:$4 sm:$0xff]   ;;  %v5039_v8 = vld [vmem:[%s7011_s0 + $0xc0] ss:$12 sps:$4 sm:$0xff]  }
  0x16   :  { %v5030_v5 = vld [vmem:[%s7011_s0 + $0x198] ss:$12 sps:$4 sm:$0xff]   ;;  %v5036_v9 = vld [vmem:[%s7011_s0 + $0x180] ss:$12 sps:$4 sm:$0xff]   ;;  %v5043_v12 = vld [vmem:[%s7011_s0 + $0x3a8] ss:$12 sps:$4 sm:$0xff]  }
  0x17   :  { %393 = vmatpush1.bf16.msra.mxu0 %v4980_v25  ;;  %4777 = vmatpush3.bf16.msra.mxu1 %v4981_v26  ;;  %v5034_v6 = vld [vmem:[%s7011_s0 + $0xc4] ss:$12 sps:$4 sm:$0xff]   ;;  %v5045_v10 = vld [vmem:[%s7011_s0 + $0x3ac] ss:$12 sps:$4 sm:$0xff]   ;;  %v5040_v13 = vld [vmem:[%s7011_s0 + $0x2e8] ss:$12 sps:$4 sm:$0xff]  }
  0x18   :  { %394 = vmatprep.subr.bf16.mxu0 %v4982_v28  ;;  %4778 = vmatprep.subr.bf16.mxu1 %v4984_v29  ;;  %v5038_v7 = vld [vmem:[%s7011_s0 + $0x184] ss:$12 sps:$4 sm:$0xff]   ;;  %v5042_v11 = vld [vmem:[%s7011_s0 + $0x2ec] ss:$12 sps:$4 sm:$0xff]   ;;  %v5051_v14 = vld [vmem:[%s7011_s0 + $0x394] ss:$12 sps:$4 sm:$0xff]  }
  0x19   :  { %v5048_v15 = vld [vmem:[%s7011_s0 + $0x2d4] ss:$12 sps:$4 sm:$0xff]   ;;  %v5049_v16 = vld [vmem:[%s7011_s0 + $0x390] ss:$12 sps:$4 sm:$0xff]   ;;  %v5052_v20 = vld [vmem:[%s7011_s0 + $0x2b8] ss:$12 sps:$4 sm:$0xff]  }
  0x1a   :  { %v5046_v17 = vld [vmem:[%s7011_s0 + $0x2d0] ss:$12 sps:$4 sm:$0xff]   ;;  %v5055_v21 = vld [vmem:[%s7011_s0 + $0x378] ss:$12 sps:$4 sm:$0xff]   ;;  %v5058_v24 = vld [vmem:[%s7011_s0 + $0x2a0] ss:$12 sps:$4 sm:$0xff]  }
  0x1b   :  { %395 = vmatpush1.bf16.msra.mxu0 %v4985_v31  ;;  %4779 = vmatpush3.bf16.msra.mxu1 %v4986_v32  ;;  %v5057_v18 = vld [vmem:[%s7011_s0 + $0x37c] ss:$12 sps:$4 sm:$0xff]   ;;  %v5063_v22 = vld [vmem:[%s7011_s0 + $0x364] ss:$12 sps:$4 sm:$0xff]   ;;  %v5061_v25 = vld [vmem:[%s7011_s0 + $0x360] ss:$12 sps:$4 sm:$0xff]  }
  0x1c   :  { %396 = vmatprep.subr.bf16.mxu0 %v4987_v33  ;;  %4780 = vmatprep.subr.bf16.mxu1 %v4989_v34  ;;  %v5054_v19 = vld [vmem:[%s7011_s0 + $0x2bc] ss:$12 sps:$4 sm:$0xff]   ;;  %v5060_v23 = vld [vmem:[%s7011_s0 + $0x2a4] ss:$12 sps:$4 sm:$0xff]   ;;  %v5069_v26 = vld [vmem:[%s7011_s0 + $0x34c] ss:$12 sps:$4 sm:$0xff]  }
  0x1d   :  { %v5066_v28 = vld [vmem:[%s7011_s0 + $0x28c] ss:$12 sps:$4 sm:$0xff]   ;;  %v5067_v29 = vld [vmem:[%s7011_s0 + $0x348] ss:$12 sps:$4 sm:$0xff]   ;;  %v5070_v33 = vld [vmem:[%s7011_s0 + $0x270] ss:$12 sps:$4 sm:$0xff]  }
  0x1e   :  { %v5064_v30 = vld [vmem:[%s7011_s0 + $0x288] ss:$12 sps:$4 sm:$0xff]   ;;  %v5073_v34 = vld [vmem:[%s7011_s0 + $0x330] ss:$12 sps:$4 sm:$0xff]   ;;  %v5079_v38 = vld [vmem:[%s7011_s0 + $0x318] ss:$12 sps:$4 sm:$0xff]  }
  0x1f   :  { %397 = vmatpush1.bf16.msra.mxu0 %v4990_v37  ;;  %4781 = vmatpush3.bf16.msra.mxu1 %v4991_v39  ;;  %v5075_v31 = vld [vmem:[%s7011_s0 + $0x334] ss:$12 sps:$4 sm:$0xff]   ;;  %v5081_v35 = vld [vmem:[%s7011_s0 + $0x31c] ss:$12 sps:$4 sm:$0xff]   ;;  %v5076_v37 = vld [vmem:[%s7011_s0 + $0x258] ss:$12 sps:$4 sm:$0xff]  }
  0x20   :  { %398 = vmatprep.subr.bf16.mxu0 %v4992_v40  ;;  %784 = vmatprep.subr.bf16.mxu1 %v4996_v42  ;;  %v5072_v32 = vld [vmem:[%s7011_s0 + $0x274] ss:$12 sps:$4 sm:$0xff]   ;;  %v5078_v36 = vld [vmem:[%s7011_s0 + $0x25c] ss:$12 sps:$4 sm:$0xff]   ;;  %v5087_v39 = vld [vmem:[%s7011_s0 + $0x304] ss:$12 sps:$4 sm:$0xff]  }
  0x21   :  { %v5084_v40 = vld [vmem:[%s7011_s0 + $0x244] ss:$12 sps:$4 sm:$0xff]   ;;  %v5082_v42 = vld [vmem:[%s7011_s0 + $0x240] ss:$12 sps:$4 sm:$0xff]   ;;  %vm3352_vm3 = vcmask 1043456   ;;  %vm3356_vm4 = vcmask 1044480  }
  0x22   :  { %456 = vmatmul.mubr.bf16.vlgmr.msra.gmra.mxu1 %v5700_v44  ;;  %vm3360_vm5 = vcmask 1045504   ;;  %vm3364_vm6 = vcmask 1046528   ;;  %vm3376_vm7 = vcmask 859136   ;;  %vm3382_vm8 = vcmask 0  }
  0x23   :  { %399 = vmatpush2.bf16.msra.mxu0 %v4997_v45  ;;  %785 = vmatpush1.bf16.msra.mxu1 %v4994_v43  ;;  %v5085_v43 = vld [vmem:[%s7011_s0 + $0x300] ss:$12 sps:$4 sm:$0xff]   ;;  %vm3877_vm9 = vcmask 7168  }
  0x24   :  { %400 = vmatprep.subr.bf16.mxu0 %v4998_v46  ;;  %786 = vmatprep.subr.bf16.mxu1 %v5002_v47  ;;  %v5091_v45 = vld [vmem:[%s7011_s0 + $0x46c] ss:$12 sps:$4 sm:$0xff]   ;;  %v5088_v46 = vld [vmem:[%s7011_s0 + $0x2f0] ss:$12 sps:$4 sm:$0xff]   ;;  %v5089_v47 = vld [vmem:[%s7011_s0 + $0x468] ss:$12 sps:$4 sm:$0xff]  }
  0x25   :  { %816 = vmatprep.mubr.bf16.mxu1 %v5691_v41 }
  0x27   :  { %401 = vmatpush2.bf16.msra.mxu0 %v5003_v48  ;;  %787 = vmatpush1.bf16.msra.mxu1 %v5000_v49  ;;  %v5092_v48 = vld [vmem:[%s7011_s0 + $0x230] ss:$12 sps:$4 sm:$0xff]   ;;  %v5096_v49 = vld [vmem:[%s7011_s0 + $0x454] ss:$12 sps:$4 sm:$0xff]  }
  0x28   :  { %402 = vmatprep.subr.bf16.mxu0 %v5004_v50  ;;  %788 = vmatprep.subr.bf16.mxu1 %v5008_v51  ;;  %v5093_v50 = vld [vmem:[%s7011_s0 + $0x2d8] ss:$12 sps:$4 sm:$0xff]   ;;  %v5094_v51 = vld [vmem:[%s7011_s0 + $0x450] ss:$12 sps:$4 sm:$0xff]  }
  0x2b   :  { %403 = vmatpush2.bf16.msra.mxu0 %v5009_v53  ;;  %789 = vmatpush1.bf16.msra.mxu1 %v5006_v52  ;;  %v5097_v52 = vld [vmem:[%s7011_s0 + $0x218] ss:$12 sps:$4 sm:$0xff]   ;;  %v5101_v53 = vld [vmem:[%s7011_s0 + $0x43c] ss:$12 sps:$4 sm:$0xff]  }
  0x2c   :  { %404 = vmatprep.subr.bf16.mxu0 %v5010_v54  ;;  %790 = vmatprep.subr.bf16.mxu1 %v5014_v55  ;;  %v5098_v54 = vld [vmem:[%s7011_s0 + $0x2c0] ss:$12 sps:$4 sm:$0xff]   ;;  %v5099_v55 = vld [vmem:[%s7011_s0 + $0x438] ss:$12 sps:$4 sm:$0xff]  }
  0x2f   :  { %405 = vmatpush2.bf16.msra.mxu0 %v5015_v56  ;;  %791 = vmatpush1.bf16.msra.mxu1 %v5012_v57  ;;  %v5102_v56 = vld [vmem:[%s7011_s0 + $0x200] ss:$12 sps:$4 sm:$0xff]   ;;  %v5106_v57 = vld [vmem:[%s7011_s0 + $0x424] ss:$12 sps:$4 sm:$0xff]  }
  0x30   :  { %406 = vmatprep.subr.bf16.mxu0 %v5016_v58  ;;  %792 = vmatprep.subr.bf16.mxu1 %v5020_v59  ;;  %v5103_v58 = vld [vmem:[%s7011_s0 + $0x2a8] ss:$12 sps:$4 sm:$0xff]   ;;  %v5104_v59 = vld [vmem:[%s7011_s0 + $0x420] ss:$12 sps:$4 sm:$0xff]  }
  0x33   :  { %407 = vmatpush2.bf16.msra.mxu0 %v5021_v60  ;;  %793 = vmatpush1.bf16.msra.mxu1 %v5018_v61  ;;  %v5107_v60 = vld [vmem:[%s7011_s0 + $0x1e8] ss:$12 sps:$4 sm:$0xff]   ;;  %v5111_v61 = vld [vmem:[%s7011_s0 + $0x40c] ss:$12 sps:$4 sm:$0xff]  }
  0x34   :  { %408 = vmatprep.subr.bf16.mxu0 %v5022_v62  ;;  %794 = vmatprep.subr.bf16.mxu1 %v5026_v63  ;;  %v5108_v62 = vld [vmem:[%s7011_s0 + $0x290] ss:$12 sps:$4 sm:$0xff]   ;;  %v5109_v63 = vld [vmem:[%s7011_s0 + $0x408] ss:$12 sps:$4 sm:$0xff]  }
  0x37   :  { %409 = vmatpush2.bf16.msra.mxu0 %v5027_v0  ;;  %795 = vmatpush1.bf16.msra.mxu1 %v5024_v1  ;;  %v5112_v0 = vld [vmem:[%s7011_s0 + $0x1d0] ss:$12 sps:$4 sm:$0xff]   ;;  %v5116_v1 = vld [vmem:[%s7011_s0 + $0x3f4] ss:$12 sps:$4 sm:$0xff]  }
  0x38   :  { %410 = vmatprep.subr.bf16.mxu0 %v5028_v2  ;;  %796 = vmatprep.subr.bf16.mxu1 %v5032_v3  ;;  %v5113_v2 = vld [vmem:[%s7011_s0 + $0x278] ss:$12 sps:$4 sm:$0xff]   ;;  %v5114_v3 = vld [vmem:[%s7011_s0 + $0x3f0] ss:$12 sps:$4 sm:$0xff]  }
  0x3b   :  { %411 = vmatpush2.bf16.msra.mxu0 %v5033_v4  ;;  %797 = vmatpush1.bf16.msra.mxu1 %v5030_v5  ;;  %v5117_v4 = vld [vmem:[%s7011_s0 + $0x1b8] ss:$12 sps:$4 sm:$0xff]   ;;  %v5121_v5 = vld [vmem:[%s7011_s0 + $0x3dc] ss:$12 sps:$4 sm:$0xff]  }
  0x3c   :  { %412 = vmatprep.subr.bf16.mxu0 %v5034_v6  ;;  %798 = vmatprep.subr.bf16.mxu1 %v5038_v7  ;;  %v5118_v6 = vld [vmem:[%s7011_s0 + $0x260] ss:$12 sps:$4 sm:$0xff]   ;;  %v5119_v7 = vld [vmem:[%s7011_s0 + $0x3d8] ss:$12 sps:$4 sm:$0xff]  }
  0x3f   :  { %413 = vmatpush2.bf16.msra.mxu0 %v5039_v8  ;;  %799 = vmatpush1.bf16.msra.mxu1 %v5036_v9  ;;  %v5122_v8 = vld [vmem:[%s7011_s0 + $0x1a0] ss:$12 sps:$4 sm:$0xff]   ;;  %v5126_v9 = vld [vmem:[%s7011_s0 + $0x3c4] ss:$12 sps:$4 sm:$0xff]  }
  0x40   :  { %1186 = vmatprep.subr.bf16.mxu0 %v5045_v10  ;;  %800 = vmatprep.subr.bf16.mxu1 %v5042_v11  ;;  %v5123_v10 = vld [vmem:[%s7011_s0 + $0x248] ss:$12 sps:$4 sm:$0xff]   ;;  %v5124_v11 = vld [vmem:[%s7011_s0 + $0x3c0] ss:$12 sps:$4 sm:$0xff]  }
  0x42   :  { %415 = vmatmul.mubr.bf16.vlgmr.msra.gmra.mxu0 %v5700_v44 }
  0x43   :  { %1187 = vmatpush1.bf16.msra.mxu0 %v5043_v12  ;;  %1218 = vmatprep.mubr.bf16.mxu0 %v5691_v41  ;;  %v5127_v12 = vld [vmem:[%s7011_s0 + $0x188] ss:$12 sps:$4 sm:$0xff]  }
  0x44   :  { %801 = vmatpush2.bf16.msra.mxu1 %v5040_v13  ;;  %1188 = vmatprep.subr.bf16.mxu0 %v5051_v14  ;;  %v5130_v13 = vld [vmem:[%s7011_s0 + $0x5f0] ss:$12 sps:$4 sm:$0xff]  }
  0x45   :  { %802 = vmatprep.subr.bf16.mxu1 %v5048_v15  ;;  %v5128_v14 = vld [vmem:[%s7011_s0 + $0x470] ss:$12 sps:$4 sm:$0xff]  }
  0x46   :  { %v5131_v15 = vld [vmem:[%s7011_s0 + $0x530] ss:$12 sps:$4 sm:$0xff]  }
  0x47   :  { %1189 = vmatpush1.bf16.msra.mxu0 %v5049_v16  ;;  %v5129_v16 = vld [vmem:[%s7011_s0 + $0x3b0] ss:$12 sps:$4 sm:$0xff]  }
  0x48   :  { %803 = vmatpush2.bf16.msra.mxu1 %v5046_v17  ;;  %1190 = vmatprep.subr.bf16.mxu0 %v5057_v18  ;;  %v5134_v17 = vld [vmem:[%s7011_s0 + $0x5d8] ss:$12 sps:$4 sm:$0xff]  }
  0x49   :  { %804 = vmatprep.subr.bf16.mxu1 %v5054_v19  ;;  %v5132_v18 = vld [vmem:[%s7011_s0 + $0x458] ss:$12 sps:$4 sm:$0xff]  }
  0x4a   :  { %v5135_v19 = vld [vmem:[%s7011_s0 + $0x518] ss:$12 sps:$4 sm:$0xff]  }
  0x4b   :  { %1191 = vmatpush1.bf16.msra.mxu0 %v5055_v21  ;;  %v5138_v21 = vld [vmem:[%s7011_s0 + $0x5c0] ss:$12 sps:$4 sm:$0xff]  }
  0x4c   :  { %805 = vmatpush2.bf16.msra.mxu1 %v5052_v20  ;;  %1192 = vmatprep.subr.bf16.mxu0 %v5063_v22  ;;  %v5133_v20 = vld [vmem:[%s7011_s0 + $0x398] ss:$12 sps:$4 sm:$0xff]   ;;  %v5136_v22 = vld [vmem:[%s7011_s0 + $0x440] ss:$12 sps:$4 sm:$0xff]  }
  0x4d   :  { %806 = vmatprep.subr.bf16.mxu1 %v5060_v23  ;;  %v5139_v23 = vld [vmem:[%s7011_s0 + $0x500] ss:$12 sps:$4 sm:$0xff]  }
  0x4f   :  { %1193 = vmatpush1.bf16.msra.mxu0 %v5061_v25  ;;  %v5142_v25 = vld [vmem:[%s7011_s0 + $0x5a8] ss:$12 sps:$4 sm:$0xff]  }
  0x50   :  { %807 = vmatpush2.bf16.msra.mxu1 %v5058_v24  ;;  %1194 = vmatprep.subr.bf16.mxu0 %v5069_v26  ;;  %v5137_v24 = vld [vmem:[%s7011_s0 + $0x380] ss:$12 sps:$4 sm:$0xff]   ;;  %v5140_v26 = vld [vmem:[%s7011_s0 + $0x428] ss:$12 sps:$4 sm:$0xff]  }
  0x51   :  { %808 = vmatprep.subr.bf16.mxu1 %v5066_v28  ;;  %v5143_v28 = vld [vmem:[%s7011_s0 + $0x4e8] ss:$12 sps:$4 sm:$0xff]  }
  0x53   :  { %1195 = vmatpush1.bf16.msra.mxu0 %v5067_v29  ;;  %v5141_v29 = vld [vmem:[%s7011_s0 + $0x368] ss:$12 sps:$4 sm:$0xff]  }
  0x54   :  { %809 = vmatpush2.bf16.msra.mxu1 %v5064_v30  ;;  %1196 = vmatprep.subr.bf16.mxu0 %v5075_v31  ;;  %v5146_v30 = vld [vmem:[%s7011_s0 + $0x590] ss:$12 sps:$4 sm:$0xff]  }
  0x55   :  { %810 = vmatprep.subr.bf16.mxu1 %v5072_v32  ;;  %v5144_v31 = vld [vmem:[%s7011_s0 + $0x410] ss:$12 sps:$4 sm:$0xff]  }
  0x56   :  { %v5147_v32 = vld [vmem:[%s7011_s0 + $0x4d0] ss:$12 sps:$4 sm:$0xff]  }
  0x57   :  { %1197 = vmatpush1.bf16.msra.mxu0 %v5073_v34  ;;  %v5150_v34 = vld [vmem:[%s7011_s0 + $0x578] ss:$12 sps:$4 sm:$0xff]  }
  0x58   :  { %811 = vmatpush2.bf16.msra.mxu1 %v5070_v33  ;;  %1198 = vmatprep.subr.bf16.mxu0 %v5081_v35  ;;  %v5145_v33 = vld [vmem:[%s7011_s0 + $0x350] ss:$12 sps:$4 sm:$0xff]   ;;  %v5148_v35 = vld [vmem:[%s7011_s0 + $0x3f8] ss:$12 sps:$4 sm:$0xff]  }
  0x59   :  { %812 = vmatprep.subr.bf16.mxu1 %v5078_v36  ;;  %v5151_v36 = vld [vmem:[%s7011_s0 + $0x4b8] ss:$12 sps:$4 sm:$0xff]  }
  0x5b   :  { %1199 = vmatpush1.bf16.msra.mxu0 %v5079_v38  ;;  %v5154_v38 = vld [vmem:[%s7011_s0 + $0x560] ss:$12 sps:$4 sm:$0xff]  }
  0x5c   :  { %813 = vmatpush2.bf16.msra.mxu1 %v5076_v37  ;;  %1200 = vmatprep.subr.bf16.mxu0 %v5087_v39  ;;  %v5149_v37 = vld [vmem:[%s7011_s0 + $0x338] ss:$12 sps:$4 sm:$0xff]   ;;  %v5152_v39 = vld [vmem:[%s7011_s0 + $0x3e0] ss:$12 sps:$4 sm:$0xff]  }
  0x5d   :  { %814 = vmatprep.subr.bf16.mxu1 %v5084_v40  ;;  %v5155_v40 = vld [vmem:[%s7011_s0 + $0x4a0] ss:$12 sps:$4 sm:$0xff]  }
  0x5f   :  { %1201 = vmatpush1.bf16.msra.mxu0 %v5085_v43  ;;  %v5158_v43 = vld [vmem:[%s7011_s0 + $0x548] ss:$12 sps:$4 sm:$0xff]  }
  0x60   :  { %815 = vmatpush2.bf16.msra.mxu1 %v5082_v42  ;;  %1202 = vmatprep.subr.bf16.mxu0 %v5091_v45  ;;  %v5153_v42 = vld [vmem:[%s7011_s0 + $0x320] ss:$12 sps:$4 sm:$0xff]   ;;  %v5156_v45 = vld [vmem:[%s7011_s0 + $0x3c8] ss:$12 sps:$4 sm:$0xff]  }
  0x61   :  { %4788 = vmatprep.subr.bf16.mxu1 %v5088_v46  ;;  %v5159_v46 = vld [vmem:[%s7011_s0 + $0x488] ss:$12 sps:$4 sm:$0xff]  }
  0x63   :  { %817 = vmatmul.mubr.bf16.vlgmr.msra.gmra.mxu1 %v5700_v44  ;;  %1203 = vmatpush2.bf16.msra.mxu0 %v5089_v47  ;;  %v5157_v47 = vld [vmem:[%s7011_s0 + $0x308] ss:$12 sps:$4 sm:$0xff]  }
  0x64   :  { %4789 = vmatpush3.bf16.msra.mxu1 %v5092_v48  ;;  %1204 = vmatprep.subr.bf16.mxu0 %v5096_v49  ;;  %v5165_v48 = vld [vmem:[%s7011_s0 + $0x6ac] ss:$12 sps:$4 sm:$0xff]  }
  0x65   :  { %4790 = vmatprep.subr.bf16.mxu1 %v5093_v50  ;;  %857 = vmatprep.mubr.bf16.mxu1 %v5691_v41  ;;  %v5162_v49 = vld [vmem:[%s7011_s0 + $0x52c] ss:$12 sps:$4 sm:$0xff]   ;;  %v5163_v50 = vld [vmem:[%s7011_s0 + $0x6a8] ss:$12 sps:$4 sm:$0xff]  }
  0x67   :  { %1205 = vmatpush2.bf16.msra.mxu0 %v5094_v51  ;;  %v5160_v51 = vld [vmem:[%s7011_s0 + $0x528] ss:$12 sps:$4 sm:$0xff]  }
  0x68   :  { %4791 = vmatpush3.bf16.msra.mxu1 %v5097_v52  ;;  %1206 = vmatprep.subr.bf16.mxu0 %v5101_v53  ;;  %v5171_v52 = vld [vmem:[%s7011_s0 + $0x694] ss:$12 sps:$4 sm:$0xff]  }
  0x69   :  { %4792 = vmatprep.subr.bf16.mxu1 %v5098_v54  ;;  %v5168_v53 = vld [vmem:[%s7011_s0 + $0x514] ss:$12 sps:$4 sm:$0xff]   ;;  %v5169_v54 = vld [vmem:[%s7011_s0 + $0x690] ss:$12 sps:$4 sm:$0xff]  }
  0x6b   :  { %1207 = vmatpush2.bf16.msra.mxu0 %v5099_v55  ;;  %v5166_v55 = vld [vmem:[%s7011_s0 + $0x510] ss:$12 sps:$4 sm:$0xff]  }
  0x6c   :  { %4793 = vmatpush3.bf16.msra.mxu1 %v5102_v56  ;;  %1208 = vmatprep.subr.bf16.mxu0 %v5106_v57  ;;  %v5177_v56 = vld [vmem:[%s7011_s0 + $0x67c] ss:$12 sps:$4 sm:$0xff]  }
  0x6d   :  { %4794 = vmatprep.subr.bf16.mxu1 %v5103_v58  ;;  %v5174_v57 = vld [vmem:[%s7011_s0 + $0x4fc] ss:$12 sps:$4 sm:$0xff]   ;;  %v5175_v58 = vld [vmem:[%s7011_s0 + $0x678] ss:$12 sps:$4 sm:$0xff]  }
  0x6f   :  { %1209 = vmatpush2.bf16.msra.mxu0 %v5104_v59  ;;  %v5172_v59 = vld [vmem:[%s7011_s0 + $0x4f8] ss:$12 sps:$4 sm:$0xff]  }
  0x70   :  { %4795 = vmatpush3.bf16.msra.mxu1 %v5107_v60  ;;  %1210 = vmatprep.subr.bf16.mxu0 %v5111_v61  ;;  %v5183_v60 = vld [vmem:[%s7011_s0 + $0x664] ss:$12 sps:$4 sm:$0xff]  }
  0x71   :  { %4796 = vmatprep.subr.bf16.mxu1 %v5108_v62  ;;  %v5180_v61 = vld [vmem:[%s7011_s0 + $0x4e4] ss:$12 sps:$4 sm:$0xff]   ;;  %v5178_v62 = vld [vmem:[%s7011_s0 + $0x4e0] ss:$12 sps:$4 sm:$0xff]  }
  0x73   :  { %1211 = vmatpush2.bf16.msra.mxu0 %v5109_v63  ;;  %v5181_v63 = vld [vmem:[%s7011_s0 + $0x660] ss:$12 sps:$4 sm:$0xff]  }
  0x74   :  { %4797 = vmatpush3.bf16.msra.mxu1 %v5112_v0  ;;  %1212 = vmatprep.subr.bf16.mxu0 %v5116_v1  ;;  %v5189_v0 = vld [vmem:[%s7011_s0 + $0x64c] ss:$12 sps:$4 sm:$0xff]  }
  0x75   :  { %4798 = vmatprep.subr.bf16.mxu1 %v5113_v2  ;;  %v5186_v1 = vld [vmem:[%s7011_s0 + $0x4cc] ss:$12 sps:$4 sm:$0xff]   ;;  %v5184_v2 = vld [vmem:[%s7011_s0 + $0x4c8] ss:$12 sps:$4 sm:$0xff]  }
  0x77   :  { %1213 = vmatpush2.bf16.msra.mxu0 %v5114_v3  ;;  %v5187_v3 = vld [vmem:[%s7011_s0 + $0x648] ss:$12 sps:$4 sm:$0xff]  }
  0x78   :  { %4799 = vmatpush3.bf16.msra.mxu1 %v5117_v4  ;;  %1214 = vmatprep.subr.bf16.mxu0 %v5121_v5  ;;  %v5195_v4 = vld [vmem:[%s7011_s0 + $0x634] ss:$12 sps:$4 sm:$0xff]  }
  0x79   :  { %4800 = vmatprep.subr.bf16.mxu1 %v5118_v6  ;;  %v5192_v5 = vld [vmem:[%s7011_s0 + $0x4b4] ss:$12 sps:$4 sm:$0xff]   ;;  %v5190_v6 = vld [vmem:[%s7011_s0 + $0x4b0] ss:$12 sps:$4 sm:$0xff]  }
  0x7b   :  { %1215 = vmatpush2.bf16.msra.mxu0 %v5119_v7  ;;  %v5193_v7 = vld [vmem:[%s7011_s0 + $0x630] ss:$12 sps:$4 sm:$0xff]  }
  0x7c   :  { %4801 = vmatpush3.bf16.msra.mxu1 %v5122_v8  ;;  %1216 = vmatprep.subr.bf16.mxu0 %v5126_v9  ;;  %v5201_v8 = vld [vmem:[%s7011_s0 + $0x61c] ss:$12 sps:$4 sm:$0xff]  }
  0x7d   :  { %4802 = vmatprep.subr.bf16.mxu1 %v5123_v10  ;;  %v5198_v9 = vld [vmem:[%s7011_s0 + $0x49c] ss:$12 sps:$4 sm:$0xff]   ;;  %v5196_v10 = vld [vmem:[%s7011_s0 + $0x498] ss:$12 sps:$4 sm:$0xff]  }
  0x7f   :  { %1217 = vmatpush2.bf16.msra.mxu0 %v5124_v11  ;;  %v5199_v11 = vld [vmem:[%s7011_s0 + $0x618] ss:$12 sps:$4 sm:$0xff]  }
  0x80   :  { %4803 = vmatpush3.bf16.msra.mxu1 %v5127_v12  ;;  %4832 = vmatprep.subr.bf16.mxu0 %v5130_v13  ;;  %v5207_v12 = vld [vmem:[%s7011_s0 + $0x604] ss:$12 sps:$4 sm:$0xff]  }
  0x81   :  { %4810 = vmatprep.subr.bf16.mxu1 %v5128_v14  ;;  %v5204_v13 = vld [vmem:[%s7011_s0 + $0x484] ss:$12 sps:$4 sm:$0xff]   ;;  %v5202_v14 = vld [vmem:[%s7011_s0 + $0x480] ss:$12 sps:$4 sm:$0xff]  }
  0x82   :  { %1219 = vmatmul.mubr.bf16.vlgmr.msra.gmra.mxu0 %v5700_v44 }
  0x83   :  { %858 = vmatmul.mubr.bf16.vlgmr.msra.gmra.mxu1 %v5700_v44  ;;  %4833 = vmatpush3.bf16.msra.mxu0 %v5131_v15  ;;  %v5205_v15 = vld [vmem:[%s7011_s0 + $0x600] ss:$12 sps:$4 sm:$0xff]  }
  0x84   :  { %4811 = vmatpush3.bf16.msra.mxu1 %v5129_v16  ;;  %4834 = vmatprep.subr.bf16.mxu0 %v5134_v17  ;;  %v5213_v16 = vld [vmem:[%s7011_s0 + $0x76c] ss:$12 sps:$4 sm:$0xff]  }
  0x85   :  { %4812 = vmatprep.subr.bf16.mxu1 %v5132_v18  ;;  %1259 = vmatprep.mubr.bf16.mxu1 %v5691_v41  ;;  %v5210_v17 = vld [vmem:[%s7011_s0 + $0x5ec] ss:$12 sps:$4 sm:$0xff]   ;;  %v5208_v18 = vld [vmem:[%s7011_s0 + $0x5e8] ss:$12 sps:$4 sm:$0xff]  }
  0x86   :  { %1661 = vmatprep.mubr.bf16.mxu0 %v5691_v41 }
  0x87   :  { %4835 = vmatpush3.bf16.msra.mxu0 %v5135_v19  ;;  %v5211_v19 = vld [vmem:[%s7011_s0 + $0x768] ss:$12 sps:$4 sm:$0xff]  }
  0x88   :  { %4813 = vmatpush3.bf16.msra.mxu1 %v5133_v20  ;;  %4836 = vmatprep.subr.bf16.mxu0 %v5138_v21  ;;  %v5219_v20 = vld [vmem:[%s7011_s0 + $0x754] ss:$12 sps:$4 sm:$0xff]  }
  0x89   :  { %4814 = vmatprep.subr.bf16.mxu1 %v5136_v22  ;;  %v5216_v21 = vld [vmem:[%s7011_s0 + $0x5d4] ss:$12 sps:$4 sm:$0xff]   ;;  %v5214_v22 = vld [vmem:[%s7011_s0 + $0x5d0] ss:$12 sps:$4 sm:$0xff]  }
  0x8b   :  { %4837 = vmatpush3.bf16.msra.mxu0 %v5139_v23  ;;  %v5217_v23 = vld [vmem:[%s7011_s0 + $0x750] ss:$12 sps:$4 sm:$0xff]  }
  0x8c   :  { %4815 = vmatpush3.bf16.msra.mxu1 %v5137_v24  ;;  %4838 = vmatprep.subr.bf16.mxu0 %v5142_v25  ;;  %v5225_v24 = vld [vmem:[%s7011_s0 + $0x73c] ss:$12 sps:$4 sm:$0xff]  }
  0x8d   :  { %4816 = vmatprep.subr.bf16.mxu1 %v5140_v26  ;;  %v5222_v25 = vld [vmem:[%s7011_s0 + $0x5bc] ss:$12 sps:$4 sm:$0xff]   ;;  %v5220_v26 = vld [vmem:[%s7011_s0 + $0x5b8] ss:$12 sps:$4 sm:$0xff]  }
  0x8f   :  { %4839 = vmatpush3.bf16.msra.mxu0 %v5143_v28  ;;  %v5223_v28 = vld [vmem:[%s7011_s0 + $0x738] ss:$12 sps:$4 sm:$0xff]  }
  0x90   :  { %4817 = vmatpush3.bf16.msra.mxu1 %v5141_v29  ;;  %4840 = vmatprep.subr.bf16.mxu0 %v5146_v30  ;;  %v5231_v29 = vld [vmem:[%s7011_s0 + $0x724] ss:$12 sps:$4 sm:$0xff]  }
  0x91   :  { %4818 = vmatprep.subr.bf16.mxu1 %v5144_v31  ;;  %v5228_v30 = vld [vmem:[%s7011_s0 + $0x5a4] ss:$12 sps:$4 sm:$0xff]   ;;  %v5229_v31 = vld [vmem:[%s7011_s0 + $0x720] ss:$12 sps:$4 sm:$0xff]  }
  0x93   :  { %4841 = vmatpush3.bf16.msra.mxu0 %v5147_v32  ;;  %v5226_v32 = vld [vmem:[%s7011_s0 + $0x5a0] ss:$12 sps:$4 sm:$0xff]  }
  0x94   :  { %4819 = vmatpush3.bf16.msra.mxu1 %v5145_v33  ;;  %4842 = vmatprep.subr.bf16.mxu0 %v5150_v34  ;;  %v5237_v33 = vld [vmem:[%s7011_s0 + $0x70c] ss:$12 sps:$4 sm:$0xff]  }
  0x95   :  { %4820 = vmatprep.subr.bf16.mxu1 %v5148_v35  ;;  %v5234_v34 = vld [vmem:[%s7011_s0 + $0x58c] ss:$12 sps:$4 sm:$0xff]   ;;  %v5235_v35 = vld [vmem:[%s7011_s0 + $0x708] ss:$12 sps:$4 sm:$0xff]  }
  0x97   :  { %4843 = vmatpush3.bf16.msra.mxu0 %v5151_v36  ;;  %v5232_v36 = vld [vmem:[%s7011_s0 + $0x588] ss:$12 sps:$4 sm:$0xff]  }
  0x98   :  { %4821 = vmatpush3.bf16.msra.mxu1 %v5149_v37  ;;  %4844 = vmatprep.subr.bf16.mxu0 %v5154_v38  ;;  %v5243_v37 = vld [vmem:[%s7011_s0 + $0x6f4] ss:$12 sps:$4 sm:$0xff]  }
  0x99   :  { %4822 = vmatprep.subr.bf16.mxu1 %v5152_v39  ;;  %v5240_v38 = vld [vmem:[%s7011_s0 + $0x574] ss:$12 sps:$4 sm:$0xff]   ;;  %v5241_v39 = vld [vmem:[%s7011_s0 + $0x6f0] ss:$12 sps:$4 sm:$0xff]  }
  0x9b   :  { %4845 = vmatpush3.bf16.msra.mxu0 %v5155_v40  ;;  %v5238_v40 = vld [vmem:[%s7011_s0 + $0x570] ss:$12 sps:$4 sm:$0xff]  }
  0x9c   :  { %4823 = vmatpush3.bf16.msra.mxu1 %v5153_v42  ;;  %4846 = vmatprep.subr.bf16.mxu0 %v5158_v43  ;;  %v5249_v42 = vld [vmem:[%s7011_s0 + $0x6dc] ss:$12 sps:$4 sm:$0xff]  }
  0x9d   :  { %4824 = vmatprep.subr.bf16.mxu1 %v5156_v45  ;;  %v5246_v43 = vld [vmem:[%s7011_s0 + $0x55c] ss:$12 sps:$4 sm:$0xff]   ;;  %v5247_v45 = vld [vmem:[%s7011_s0 + $0x6d8] ss:$12 sps:$4 sm:$0xff]  }
  0x9f   :  { %4847 = vmatpush3.bf16.msra.mxu0 %v5159_v46  ;;  %v5244_v46 = vld [vmem:[%s7011_s0 + $0x558] ss:$12 sps:$4 sm:$0xff]  }
  0xa0   :  { %4825 = vmatpush3.bf16.msra.mxu1 %v5157_v47  ;;  %1990 = vmatprep.subr.bf16.mxu0 %v5165_v48  ;;  %v5255_v47 = vld [vmem:[%s7011_s0 + $0x6c4] ss:$12 sps:$4 sm:$0xff]  }
  0xa1   :  { %1588 = vmatprep.subr.bf16.mxu1 %v5162_v49  ;;  %v5252_v48 = vld [vmem:[%s7011_s0 + $0x544] ss:$12 sps:$4 sm:$0xff]   ;;  %v5253_v49 = vld [vmem:[%s7011_s0 + $0x6c0] ss:$12 sps:$4 sm:$0xff]  }
  0xa2   :  { %1662 = vmatmul.mubr.bf16.vlgmr.msra.gmra.mxu0 %v5700_v44 }
  0xa3   :  { %1260 = vmatmul.mubr.bf16.vlgmr.msra.gmra.mxu1 %v5700_v44  ;;  %1991 = vmatpush1.bf16.msra.mxu0 %v5163_v50  ;;  %v5250_v50 = vld [vmem:[%s7011_s0 + $0x540] ss:$12 sps:$4 sm:$0xff]  }
  0xa4   :  { %1589 = vmatpush1.bf16.msra.mxu1 %v5160_v51  ;;  %1992 = vmatprep.subr.bf16.mxu0 %v5171_v52  ;;  %v5258_v51 = vld [vmem:[%s7011_s0 + $0x8f0] ss:$12 sps:$4 sm:$0xff]  }
  0xa5   :  { %1590 = vmatprep.subr.bf16.mxu1 %v5168_v53  ;;  %1620 = vmatprep.mubr.bf16.mxu1 %v5691_v41  ;;  %v5256_v52 = vld [vmem:[%s7011_s0 + $0x770] ss:$12 sps:$4 sm:$0xff]  }
  0xa6   :  { %2022 = vmatprep.mubr.bf16.mxu0 %v5691_v41  ;;  %v5259_v53 = vld [vmem:[%s7011_s0 + $0x830] ss:$12 sps:$4 sm:$0xff]  }
  0xa7   :  { %1993 = vmatpush1.bf16.msra.mxu0 %v5169_v54  ;;  %v5257_v54 = vld [vmem:[%s7011_s0 + $0x6b0] ss:$12 sps:$4 sm:$0xff]  }
  0xa8   :  { %1591 = vmatpush1.bf16.msra.mxu1 %v5166_v55  ;;  %1994 = vmatprep.subr.bf16.mxu0 %v5177_v56  ;;  %v5262_v55 = vld [vmem:[%s7011_s0 + $0x8d8] ss:$12 sps:$4 sm:$0xff]  }
  0xa9   :  { %1592 = vmatprep.subr.bf16.mxu1 %v5174_v57  ;;  %v5260_v56 = vld [vmem:[%s7011_s0 + $0x758] ss:$12 sps:$4 sm:$0xff]  }
  0xab   :  { %1995 = vmatpush1.bf16.msra.mxu0 %v5175_v58  ;;  %v5263_v58 = vld [vmem:[%s7011_s0 + $0x818] ss:$12 sps:$4 sm:$0xff]  }
  0xac   :  { %1593 = vmatpush1.bf16.msra.mxu1 %v5172_v59  ;;  %1996 = vmatprep.subr.bf16.mxu0 %v5183_v60  ;;  %v5261_v59 = vld [vmem:[%s7011_s0 + $0x698] ss:$12 sps:$4 sm:$0xff]   ;;  %v5266_v60 = vld [vmem:[%s7011_s0 + $0x8c0] ss:$12 sps:$4 sm:$0xff]  }
  0xad   :  { %1594 = vmatprep.subr.bf16.mxu1 %v5180_v61 }
  0xaf   :  { %1997 = vmatpush1.bf16.msra.mxu0 %v5181_v63 }
  0xb0   :  { %1595 = vmatpush1.bf16.msra.mxu1 %v5178_v62  ;;  %1998 = vmatprep.subr.bf16.mxu0 %v5189_v0  ;;  %v5264_v62 = vld [vmem:[%s7011_s0 + $0x740] ss:$12 sps:$4 sm:$0xff]  }
  0xb1   :  { %1596 = vmatprep.subr.bf16.mxu1 %v5186_v1  ;;  %v5267_v1 = vld [vmem:[%s7011_s0 + $0x800] ss:$12 sps:$4 sm:$0xff]  }
  0xb3   :  { %1999 = vmatpush1.bf16.msra.mxu0 %v5187_v3  ;;  %v5270_v3 = vld [vmem:[%s7011_s0 + $0x8a8] ss:$12 sps:$4 sm:$0xff]  }
  0xb4   :  { %1597 = vmatpush1.bf16.msra.mxu1 %v5184_v2  ;;  %2000 = vmatprep.subr.bf16.mxu0 %v5195_v4  ;;  %v5265_v2 = vld [vmem:[%s7011_s0 + $0x680] ss:$12 sps:$4 sm:$0xff]  }
  0xb5   :  { %1598 = vmatprep.subr.bf16.mxu1 %v5192_v5  ;;  %v5268_v5 = vld [vmem:[%s7011_s0 + $0x728] ss:$12 sps:$4 sm:$0xff]  }
  0xb7   :  { %2001 = vmatpush1.bf16.msra.mxu0 %v5193_v7  ;;  %v5269_v7 = vld [vmem:[%s7011_s0 + $0x668] ss:$12 sps:$4 sm:$0xff]  }
  0xb8   :  { %1599 = vmatpush1.bf16.msra.mxu1 %v5190_v6  ;;  %2002 = vmatprep.subr.bf16.mxu0 %v5201_v8  ;;  %v5271_v6 = vld [vmem:[%s7011_s0 + $0x7e8] ss:$12 sps:$4 sm:$0xff]   ;;  %v5274_v8 = vld [vmem:[%s7011_s0 + $0x890] ss:$12 sps:$4 sm:$0xff]  }
  0xb9   :  { %1600 = vmatprep.subr.bf16.mxu1 %v5198_v9  ;;  %v5272_v9 = vld [vmem:[%s7011_s0 + $0x710] ss:$12 sps:$4 sm:$0xff]  }
  0xbb   :  { %2003 = vmatpush1.bf16.msra.mxu0 %v5199_v11  ;;  %v5273_v11 = vld [vmem:[%s7011_s0 + $0x650] ss:$12 sps:$4 sm:$0xff]  }
  0xbc   :  { %1601 = vmatpush1.bf16.msra.mxu1 %v5196_v10  ;;  %2004 = vmatprep.subr.bf16.mxu0 %v5207_v12  ;;  %v5275_v10 = vld [vmem:[%s7011_s0 + $0x7d0] ss:$12 sps:$4 sm:$0xff]   ;;  %v5278_v12 = vld [vmem:[%s7011_s0 + $0x878] ss:$12 sps:$4 sm:$0xff]  }
  0xbd   :  { %1602 = vmatprep.subr.bf16.mxu1 %v5204_v13  ;;  %v5276_v13 = vld [vmem:[%s7011_s0 + $0x6f8] ss:$12 sps:$4 sm:$0xff]  }
  0xbf   :  { %2005 = vmatpush1.bf16.msra.mxu0 %v5205_v15  ;;  %v5277_v15 = vld [vmem:[%s7011_s0 + $0x638] ss:$12 sps:$4 sm:$0xff]  }
  0xc0   :  { %1603 = vmatpush1.bf16.msra.mxu1 %v5202_v14  ;;  %2006 = vmatprep.subr.bf16.mxu0 %v5213_v16  ;;  %v5279_v14 = vld [vmem:[%s7011_s0 + $0x7b8] ss:$12 sps:$4 sm:$0xff]   ;;  %v5282_v16 = vld [vmem:[%s7011_s0 + $0x860] ss:$12 sps:$4 sm:$0xff]  }
  0xc1   :  { %1604 = vmatprep.subr.bf16.mxu1 %v5210_v17  ;;  %v5280_v17 = vld [vmem:[%s7011_s0 + $0x6e0] ss:$12 sps:$4 sm:$0xff]  }
  0xc3   :  { %2007 = vmatpush2.bf16.msra.mxu0 %v5211_v19  ;;  %v5283_v19 = vld [vmem:[%s7011_s0 + $0x7a0] ss:$12 sps:$4 sm:$0xff]  }
  0xc4   :  { %1605 = vmatpush2.bf16.msra.mxu1 %v5208_v18  ;;  %2008 = vmatprep.subr.bf16.mxu0 %v5219_v20  ;;  %v5281_v18 = vld [vmem:[%s7011_s0 + $0x620] ss:$12 sps:$4 sm:$0xff]   ;;  %v5286_v20 = vld [vmem:[%s7011_s0 + $0x848] ss:$12 sps:$4 sm:$0xff]  }
  0xc5   :  { %1606 = vmatprep.subr.bf16.mxu1 %v5216_v21  ;;  %v5284_v21 = vld [vmem:[%s7011_s0 + $0x6c8] ss:$12 sps:$4 sm:$0xff]  }
  0xc7   :  { %2009 = vmatpush2.bf16.msra.mxu0 %v5217_v23  ;;  %v5287_v23 = vld [vmem:[%s7011_s0 + $0x788] ss:$12 sps:$4 sm:$0xff]  }
  0xc8   :  { %1607 = vmatpush2.bf16.msra.mxu1 %v5214_v22  ;;  %2010 = vmatprep.subr.bf16.mxu0 %v5225_v24  ;;  %v5285_v22 = vld [vmem:[%s7011_s0 + $0x608] ss:$12 sps:$4 sm:$0xff]   ;;  %v5293_v24 = vld [vmem:[%s7011_s0 + $0x9ac] ss:$12 sps:$4 sm:$0xff]  }
  0xc9   :  { %1608 = vmatprep.subr.bf16.mxu1 %v5222_v25  ;;  %v5290_v25 = vld [vmem:[%s7011_s0 + $0x82c] ss:$12 sps:$4 sm:$0xff]  }
  0xcb   :  { %2011 = vmatpush2.bf16.msra.mxu0 %v5223_v28  ;;  %v5291_v28 = vld [vmem:[%s7011_s0 + $0x9a8] ss:$12 sps:$4 sm:$0xff]  }
  0xcc   :  { %1609 = vmatpush2.bf16.msra.mxu1 %v5220_v26  ;;  %2012 = vmatprep.subr.bf16.mxu0 %v5231_v29  ;;  %v5288_v26 = vld [vmem:[%s7011_s0 + $0x828] ss:$12 sps:$4 sm:$0xff]  }
  0xcd   :  { %1610 = vmatprep.subr.bf16.mxu1 %v5228_v30  ;;  %v5299_v29 = vld [vmem:[%s7011_s0 + $0x994] ss:$12 sps:$4 sm:$0xff]  }
  0xce   :  { %v5296_v30 = vld [vmem:[%s7011_s0 + $0x814] ss:$12 sps:$4 sm:$0xff]  }
  0xcf   :  { %2013 = vmatpush2.bf16.msra.mxu0 %v5229_v31  ;;  %v5294_v31 = vld [vmem:[%s7011_s0 + $0x810] ss:$12 sps:$4 sm:$0xff]  }
  0xd0   :  { %1611 = vmatpush2.bf16.msra.mxu1 %v5226_v32  ;;  %2014 = vmatprep.subr.bf16.mxu0 %v5237_v33  ;;  %v5297_v33 = vld [vmem:[%s7011_s0 + $0x990] ss:$12 sps:$4 sm:$0xff]  }
  0xd1   :  { %1612 = vmatprep.subr.bf16.mxu1 %v5234_v34  ;;  %v5305_v34 = vld [vmem:[%s7011_s0 + $0x97c] ss:$12 sps:$4 sm:$0xff]  }
  0xd3   :  { %2015 = vmatpush2.bf16.msra.mxu0 %v5235_v35 }
  0xd4   :  { %1613 = vmatpush2.bf16.msra.mxu1 %v5232_v36  ;;  %2016 = vmatprep.subr.bf16.mxu0 %v5243_v37  ;;  %v5302_v36 = vld [vmem:[%s7011_s0 + $0x7fc] ss:$12 sps:$4 sm:$0xff]   ;;  %v5300_v37 = vld [vmem:[%s7011_s0 + $0x7f8] ss:$12 sps:$4 sm:$0xff]  }
  0xd5   :  { %1614 = vmatprep.subr.bf16.mxu1 %v5240_v38 }
  0xd7   :  { %2017 = vmatpush2.bf16.msra.mxu0 %v5241_v39  ;;  %v5303_v39 = vld [vmem:[%s7011_s0 + $0x978] ss:$12 sps:$4 sm:$0xff]  }
  0xd8   :  { %1615 = vmatpush2.bf16.msra.mxu1 %v5238_v40  ;;  %2018 = vmatprep.subr.bf16.mxu0 %v5249_v42  ;;  %v5311_v40 = vld [vmem:[%s7011_s0 + $0x964] ss:$12 sps:$4 sm:$0xff]  }
  0xd9   :  { %1616 = vmatprep.subr.bf16.mxu1 %v5246_v43  ;;  %v5308_v43 = vld [vmem:[%s7011_s0 + $0x7e4] ss:$12 sps:$4 sm:$0xff]  }
  0xdb   :  { %2019 = vmatpush2.bf16.msra.mxu0 %v5247_v45  ;;  %v5306_v45 = vld [vmem:[%s7011_s0 + $0x7e0] ss:$12 sps:$4 sm:$0xff]  }
  0xdc   :  { %1617 = vmatpush2.bf16.msra.mxu1 %v5244_v46  ;;  %2020 = vmatprep.subr.bf16.mxu0 %v5255_v47  ;;  %v5309_v46 = vld [vmem:[%s7011_s0 + $0x960] ss:$12 sps:$4 sm:$0xff]  }
  0xdd   :  { %1618 = vmatprep.subr.bf16.mxu1 %v5252_v48  ;;  %v5317_v47 = vld [vmem:[%s7011_s0 + $0x94c] ss:$12 sps:$4 sm:$0xff]  }
  0xde   :  { %v5314_v48 = vld [vmem:[%s7011_s0 + $0x7cc] ss:$12 sps:$4 sm:$0xff]  }
  0xdf   :  { %2021 = vmatpush2.bf16.msra.mxu0 %v5253_v49  ;;  %v5312_v49 = vld [vmem:[%s7011_s0 + $0x7c8] ss:$12 sps:$4 sm:$0xff]  }
  0xe0   :  { %1619 = vmatpush2.bf16.msra.mxu1 %v5250_v50  ;;  %4876 = vmatprep.subr.bf16.mxu0 %v5258_v51  ;;  %v5315_v50 = vld [vmem:[%s7011_s0 + $0x948] ss:$12 sps:$4 sm:$0xff]  }
  0xe1   :  { %4854 = vmatprep.subr.bf16.mxu1 %v5256_v52  ;;  %v5323_v51 = vld [vmem:[%s7011_s0 + $0x934] ss:$12 sps:$4 sm:$0xff]  }
  0xe2   :  { %2023 = vmatmul.mubr.bf16.vlgmr.msra.gmra.mxu0 %v5700_v44  ;;  %v4782_v57 = vpop.f32.mrf.mxu1  ;;  %v5320_v52 = vld [vmem:[%s7011_s0 + $0x7b4] ss:$12 sps:$4 sm:$0xff]  }
  0xe3   :  { %1621 = vmatmul.mubr.bf16.vlgmr.msra.gmra.mxu1 %v5700_v44  ;;  %4877 = vmatpush3.bf16.msra.mxu0 %v5259_v53  ;;  %v5318_v53 = vld [vmem:[%s7011_s0 + $0x7b0] ss:$12 sps:$4 sm:$0xff]  }
  0xe4   :  { %4855 = vmatpush3.bf16.msra.mxu1 %v5257_v54  ;;  %4878 = vmatprep.subr.bf16.mxu0 %v5262_v55  ;;  %v4783_v61 = vpop.f32.mrf.mxu1  ;;  %v5321_v54 = vld [vmem:[%s7011_s0 + $0x930] ss:$12 sps:$4 sm:$0xff]  }
  0xe5   :  { %4856 = vmatprep.subr.bf16.mxu1 %v5260_v56  ;;  %2063 = vmatprep.mubr.bf16.mxu1 %v5691_v41  ;;  %v6317_v63 = vadd.f32 %v4783_v61, %v4782_v57  ;;  %v5329_v55 = vld [vmem:[%s7011_s0 + $0x91c] ss:$12 sps:$4 sm:$0xff]   ;;  %v5327_v57 = vld [vmem:[%s7011_s0 + $0x918] ss:$12 sps:$4 sm:$0xff]   ;;  %v5333_v61 = vld [vmem:[%s7011_s0 + $0x900] ss:$12 sps:$4 sm:$0xff]  }
  0xe6   :  { %2465 = vmatprep.mubr.bf16.mxu0 %v5691_v41  ;;  %v4785_v0 = vpop.f32.mrf.mxu1  ;;  %v5326_v56 = vld [vmem:[%s7011_s0 + $0x79c] ss:$12 sps:$4 sm:$0xff]  }
  0xe7   :  { %4879 = vmatpush3.bf16.msra.mxu0 %v5263_v58  ;;  %v5324_v58 = vld [vmem:[%s7011_s0 + $0x798] ss:$12 sps:$4 sm:$0xff]  }
  0xe8   :  { %4857 = vmatpush3.bf16.msra.mxu1 %v5261_v59  ;;  %4880 = vmatprep.subr.bf16.mxu0 %v5266_v60  ;;  %v4786_v4 = vpop.f32.mrf.mxu1  ;;  %v5335_v59 = vld [vmem:[%s7011_s0 + $0x904] ss:$12 sps:$4 sm:$0xff]   ;;  %v5341_v0 = vld [vmem:[%s7011_s0 + $0xa6c] ss:$12 sps:$4 sm:$0xff]  }
  0xe9   :  { %4858 = vmatprep.subr.bf16.mxu1 %v5264_v62  ;;  %v5332_v60 = vld [vmem:[%s7011_s0 + $0x784] ss:$12 sps:$4 sm:$0xff]   ;;  %v5330_v62 = vld [vmem:[%s7011_s0 + $0x780] ss:$12 sps:$4 sm:$0xff]  }
  0xea   :  { %v5347_v4 = vld [vmem:[%s7011_s0 + $0xa54] ss:$12 sps:$4 sm:$0xff]  }
  0xeb   :  { %4881 = vmatpush3.bf16.msra.mxu0 %v5267_v1  ;;  %v5338_v1 = vld [vmem:[%s7011_s0 + $0x8ec] ss:$12 sps:$4 sm:$0xff]  }
  0xec   :  { %4859 = vmatpush3.bf16.msra.mxu1 %v5265_v2  ;;  %4882 = vmatprep.subr.bf16.mxu0 %v5270_v3  ;;  %v5339_v2 = vld [vmem:[%s7011_s0 + $0xa68] ss:$12 sps:$4 sm:$0xff]  }
  0xed   :  { %4860 = vmatprep.subr.bf16.mxu1 %v5268_v5  ;;  %v5336_v3 = vld [vmem:[%s7011_s0 + $0x8e8] ss:$12 sps:$4 sm:$0xff]  }
  0xee   :  { %v5344_v5 = vld [vmem:[%s7011_s0 + $0x8d4] ss:$12 sps:$4 sm:$0xff]  }
  0xef   :  { %4883 = vmatpush3.bf16.msra.mxu0 %v5271_v6 }
  0xf0   :  { %4861 = vmatpush3.bf16.msra.mxu1 %v5269_v7  ;;  %4884 = vmatprep.subr.bf16.mxu0 %v5274_v8  ;;  %v5345_v7 = vld [vmem:[%s7011_s0 + $0xa50] ss:$12 sps:$4 sm:$0xff]  }
  0xf1   :  { %4862 = vmatprep.subr.bf16.mxu1 %v5272_v9  ;;  %v5342_v9 = vld [vmem:[%s7011_s0 + $0x8d0] ss:$12 sps:$4 sm:$0xff]  }
  0xf3   :  { %4885 = vmatpush3.bf16.msra.mxu0 %v5275_v10  ;;  %v5353_v10 = vld [vmem:[%s7011_s0 + $0xa3c] ss:$12 sps:$4 sm:$0xff]  }
  0xf4   :  { %4863 = vmatpush3.bf16.msra.mxu1 %v5273_v11  ;;  %4886 = vmatprep.subr.bf16.mxu0 %v5278_v12  ;;  %v5350_v12 = vld [vmem:[%s7011_s0 + $0x8bc] ss:$12 sps:$4 sm:$0xff]  }
  0xf5   :  { %4864 = vmatprep.subr.bf16.mxu1 %v5276_v13 }
  0xf7   :  { %4887 = vmatpush3.bf16.msra.mxu0 %v5279_v14 }
  0xf8   :  { %4865 = vmatpush3.bf16.msra.mxu1 %v5277_v15  ;;  %4888 = vmatprep.subr.bf16.mxu0 %v5282_v16  ;;  %v5351_v16 = vld [vmem:[%s7011_s0 + $0xa38] ss:$12 sps:$4 sm:$0xff]  }
  0xf9   :  { %4866 = vmatprep.subr.bf16.mxu1 %v5280_v17 }
  0xfb   :  { %4889 = vmatpush3.bf16.msra.mxu0 %v5283_v19  ;;  %v5359_v19 = vld [vmem:[%s7011_s0 + $0xa24] ss:$12 sps:$4 sm:$0xff]  }
  0xfc   :  { %4867 = vmatpush3.bf16.msra.mxu1 %v5281_v18  ;;  %4890 = vmatprep.subr.bf16.mxu0 %v5286_v20  ;;  %v5348_v18 = vld [vmem:[%s7011_s0 + $0x8b8] ss:$12 sps:$4 sm:$0xff]  }
  0xfd   :  { %4868 = vmatprep.subr.bf16.mxu1 %v5284_v21  ;;  %v5356_v21 = vld [vmem:[%s7011_s0 + $0x8a4] ss:$12 sps:$4 sm:$0xff]  }
  0xff   :  { %4891 = vmatpush3.bf16.msra.mxu0 %v5287_v23  ;;  %v5354_v23 = vld [vmem:[%s7011_s0 + $0x8a0] ss:$12 sps:$4 sm:$0xff]  }
 0x100   :  { %4869 = vmatpush3.bf16.msra.mxu1 %v5285_v22  ;;  %2794 = vmatprep.subr.bf16.mxu0 %v5293_v24  ;;  %v5357_v22 = vld [vmem:[%s7011_s0 + $0xa20] ss:$12 sps:$4 sm:$0xff]  }
 0x101   :  { %2392 = vmatprep.subr.bf16.mxu1 %v5290_v25  ;;  %v5365_v24 = vld [vmem:[%s7011_s0 + $0xa0c] ss:$12 sps:$4 sm:$0xff]  }
 0x102   :  { %2466 = vmatmul.mubr.bf16.vlgmr.msra.gmra.mxu0 %v5700_v44  ;;  %v6408_v32 = vpop.f32.mrf.mxu0  ;;  %v5362_v25 = vld [vmem:[%s7011_s0 + $0x88c] ss:$12 sps:$4 sm:$0xff]  }
 0x103   :  { %2064 = vmatmul.mubr.bf16.vlgmr.msra.gmra.mxu1 %v5700_v44  ;;  %2795 = vmatpush1.bf16.msra.mxu0 %v5291_v28  ;;  %v5360_v28 = vld [vmem:[%s7011_s0 + $0x888] ss:$12 sps:$4 sm:$0xff]  }
 0x104   :  { %2393 = vmatpush1.bf16.msra.mxu1 %v5288_v26  ;;  %2796 = vmatprep.subr.bf16.mxu0 %v5299_v29  ;;  %v6417_v35 = vpop.f32.mrf.mxu0  ;;  %v5363_v26 = vld [vmem:[%s7011_s0 + $0xa08] ss:$12 sps:$4 sm:$0xff]  }
 0x105   :  { %2394 = vmatprep.subr.bf16.mxu1 %v5296_v30  ;;  %2424 = vmatprep.mubr.bf16.mxu1 %v5691_v41  ;;  %v5371_v29 = vld [vmem:[%s7011_s0 + $0x9f4] ss:$12 sps:$4 sm:$0xff]  }
 0x106   :  { %v420_v38 = vpop.f32.mrf.mxu0  ;;  %2826 = vmatprep.mubr.bf16.mxu0 %v5691_v41  ;;  %v5368_v30 = vld [vmem:[%s7011_s0 + $0x874] ss:$12 sps:$4 sm:$0xff]  }
 0x107   :  { %2797 = vmatpush1.bf16.msra.mxu0 %v5297_v33  ;;  %v5377_v33 = vld [vmem:[%s7011_s0 + $0x9dc] ss:$12 sps:$4 sm:$0xff]   ;;  %v5380_v38 = vld [vmem:[%s7011_s0 + $0x844] ss:$12 sps:$4 sm:$0xff]  }
 0x108   :  { %2395 = vmatpush1.bf16.msra.mxu1 %v5294_v31  ;;  %2798 = vmatprep.subr.bf16.mxu0 %v5305_v34  ;;  %v421_v42 = vpop.f32.mrf.mxu0  ;;  %v5369_v31 = vld [vmem:[%s7011_s0 + $0x9f0] ss:$12 sps:$4 sm:$0xff]  }
 0x109   :  { %2396 = vmatprep.subr.bf16.mxu1 %v5302_v36  ;;  %v5374_v34 = vld [vmem:[%s7011_s0 + $0x85c] ss:$12 sps:$4 sm:$0xff]   ;;  %v5372_v36 = vld [vmem:[%s7011_s0 + $0x858] ss:$12 sps:$4 sm:$0xff]  }
 0x10a   :  { %v5386_v42 = vld [vmem:[%s7011_s0 + $0xbf0] ss:$12 sps:$4 sm:$0xff]  }
 0x10b   :  { %2799 = vmatpush1.bf16.msra.mxu0 %v5303_v39  ;;  %v5381_v39 = vld [vmem:[%s7011_s0 + $0x9c0] ss:$12 sps:$4 sm:$0xff]  }
 0x10c   :  { %2397 = vmatpush1.bf16.msra.mxu1 %v5300_v37  ;;  %2800 = vmatprep.subr.bf16.mxu0 %v5311_v40  ;;  %v5383_v37 = vld [vmem:[%s7011_s0 + $0x9c4] ss:$12 sps:$4 sm:$0xff]   ;;  %v5378_v40 = vld [vmem:[%s7011_s0 + $0x840] ss:$12 sps:$4 sm:$0xff]  }
 0x10d   :  { %2398 = vmatprep.subr.bf16.mxu1 %v5308_v43  ;;  %v5384_v43 = vld [vmem:[%s7011_s0 + $0xa70] ss:$12 sps:$4 sm:$0xff]  }
 0x10f   :  { %2801 = vmatpush1.bf16.msra.mxu0 %v5309_v46  ;;  %v5385_v46 = vld [vmem:[%s7011_s0 + $0x9b0] ss:$12 sps:$4 sm:$0xff]  }
 0x110   :  { %2399 = vmatpush1.bf16.msra.mxu1 %v5306_v45  ;;  %2802 = vmatprep.subr.bf16.mxu0 %v5317_v47  ;;  %v5387_v45 = vld [vmem:[%s7011_s0 + $0xb30] ss:$12 sps:$4 sm:$0xff]   ;;  %v5390_v47 = vld [vmem:[%s7011_s0 + $0xbd8] ss:$12 sps:$4 sm:$0xff]  }
 0x111   :  { %2400 = vmatprep.subr.bf16.mxu1 %v5314_v48  ;;  %v5388_v48 = vld [vmem:[%s7011_s0 + $0xa58] ss:$12 sps:$4 sm:$0xff]  }
 0x113   :  { %2803 = vmatpush1.bf16.msra.mxu0 %v5315_v50 }
 0x114   :  { %2401 = vmatpush1.bf16.msra.mxu1 %v5312_v49  ;;  %2804 = vmatprep.subr.bf16.mxu0 %v5323_v51 }
 0x115   :  { %2402 = vmatprep.subr.bf16.mxu1 %v5320_v52  ;;  %v5391_v52 = vld [vmem:[%s7011_s0 + $0xb18] ss:$12 sps:$4 sm:$0xff]  }
 0x117   :  { %2805 = vmatpush1.bf16.msra.mxu0 %v5321_v54  ;;  %v5389_v54 = vld [vmem:[%s7011_s0 + $0x998] ss:$12 sps:$4 sm:$0xff]  }
 0x118   :  { %2403 = vmatpush1.bf16.msra.mxu1 %v5318_v53  ;;  %2806 = vmatprep.subr.bf16.mxu0 %v5329_v55  ;;  %v5394_v55 = vld [vmem:[%s7011_s0 + $0xbc0] ss:$12 sps:$4 sm:$0xff]  }
 0x119   :  { %2404 = vmatprep.subr.bf16.mxu1 %v5326_v56 }
 0x11b   :  { %2807 = vmatpush1.bf16.msra.mxu0 %v5327_v57 }
 0x11c   :  { %2405 = vmatpush1.bf16.msra.mxu1 %v5324_v58  ;;  %2808 = vmatprep.subr.bf16.mxu0 %v5335_v59  ;;  %v5392_v59 = vld [vmem:[%s7011_s0 + $0xa40] ss:$12 sps:$4 sm:$0xff]  }
 0x11d   :  { %2406 = vmatprep.subr.bf16.mxu1 %v5332_v60 }
 0x11f   :  { %2809 = vmatpush1.bf16.msra.mxu0 %v5333_v61 }
 0x120   :  { %2407 = vmatpush1.bf16.msra.mxu1 %v5330_v62  ;;  %2810 = vmatprep.subr.bf16.mxu0 %v5341_v0 }
 0x121   :  { %2408 = vmatprep.subr.bf16.mxu1 %v5338_v1  ;;  %v5395_v1 = vld [vmem:[%s7011_s0 + $0xb00] ss:$12 sps:$4 sm:$0xff]  }
 0x123   :  { %v818_v6 = vpop.f32.mrf.mxu1  ;;  %2811 = vmatpush2.bf16.msra.mxu0 %v5339_v2 }
 0x124   :  { %v3280_v8 = vrot.slane %v818_v6, 7  ;;  %2409 = vmatpush2.bf16.msra.mxu1 %v5336_v3  ;;  %2812 = vmatprep.subr.bf16.mxu0 %v5347_v4  ;;  %v5393_v3 = vld [vmem:[%s7011_s0 + $0x980] ss:$12 sps:$4 sm:$0xff]   ;;  %v5398_v4 = vld [vmem:[%s7011_s0 + $0xba8] ss:$12 sps:$4 sm:$0xff]  }
 0x125   :  { %v820_v11 = vpop.f32.mrf.mxu1  ;;  %2410 = vmatprep.subr.bf16.mxu1 %v5344_v5 }
 0x126   :  { %v6522_v13 = vsel %vm3340_vm0, %v6408_v32, %v3280_v8  ;;  %v3281_v14 = vrot.slane %v820_v11, 7  ;;  %v5366_v32 = vld [vmem:[%s7011_s0 + $0x870] ss:$12 sps:$4 sm:$0xff]  }
 0x127   :  { %v822_v15 = vpop.f32.mrf.mxu1  ;;  %2813 = vmatpush2.bf16.msra.mxu0 %v5345_v7  ;;  %v5396_v7 = vld [vmem:[%s7011_s0 + $0xa28] ss:$12 sps:$4 sm:$0xff]   ;;  %v5402_v11 = vld [vmem:[%s7011_s0 + $0xb90] ss:$12 sps:$4 sm:$0xff]  }
 0x128   :  { %v6529_v17 = vsel %vm3340_vm0, %v6417_v35, %v3281_v14  ;;  %2411 = vmatpush2.bf16.msra.mxu1 %v5342_v9  ;;  %2814 = vmatprep.subr.bf16.mxu0 %v5353_v10  ;;  %v5375_v35 = vld [vmem:[%s7011_s0 + $0x9d8] ss:$12 sps:$4 sm:$0xff]   ;;  %v5399_v9 = vld [vmem:[%s7011_s0 + $0xae8] ss:$12 sps:$4 sm:$0xff]  }
 0x129   :  { %v823_v20 = vpop.f32.mrf.mxu1  ;;  %2412 = vmatprep.subr.bf16.mxu1 %v5350_v12  ;;  %v5397_v10 = vld [vmem:[%s7011_s0 + $0x968] ss:$12 sps:$4 sm:$0xff]   ;;  %v5403_v12 = vld [vmem:[%s7011_s0 + $0xad0] ss:$12 sps:$4 sm:$0xff]   ;;  %v5406_v14 = vld [vmem:[%s7011_s0 + $0xb78] ss:$12 sps:$4 sm:$0xff]  }
 0x12a   :  { %v5404_v15 = vld [vmem:[%s7011_s0 + $0x9f8] ss:$12 sps:$4 sm:$0xff]   ;;  %v5411_v20 = vld [vmem:[%s7011_s0 + $0xaa0] ss:$12 sps:$4 sm:$0xff]  }
 0x12b   :  { %2815 = vmatpush2.bf16.msra.mxu0 %v5351_v16  ;;  %v5407_v16 = vld [vmem:[%s7011_s0 + $0xab8] ss:$12 sps:$4 sm:$0xff]  }
 0x12c   :  { %2413 = vmatpush2.bf16.msra.mxu1 %v5348_v18  ;;  %2816 = vmatprep.subr.bf16.mxu0 %v5359_v19  ;;  %v5410_v18 = vld [vmem:[%s7011_s0 + $0xb60] ss:$12 sps:$4 sm:$0xff]  }
 0x12d   :  { %2414 = vmatprep.subr.bf16.mxu1 %v5356_v21  ;;  %v5408_v19 = vld [vmem:[%s7011_s0 + $0x9e0] ss:$12 sps:$4 sm:$0xff]  }
 0x12e   :  { %v5409_v21 = vld [vmem:[%s7011_s0 + $0x920] ss:$12 sps:$4 sm:$0xff]  }
 0x12f   :  { %2817 = vmatpush2.bf16.msra.mxu0 %v5357_v22  ;;  %v5414_v22 = vld [vmem:[%s7011_s0 + $0xb48] ss:$12 sps:$4 sm:$0xff]  }
 0x130   :  { %2415 = vmatpush2.bf16.msra.mxu1 %v5354_v23  ;;  %2818 = vmatprep.subr.bf16.mxu0 %v5365_v24  ;;  %v5412_v23 = vld [vmem:[%s7011_s0 + $0x9c8] ss:$12 sps:$4 sm:$0xff]  }
 0x131   :  { %2416 = vmatprep.subr.bf16.mxu1 %v5362_v25  ;;  %v5415_v24 = vld [vmem:[%s7011_s0 + $0xa88] ss:$12 sps:$4 sm:$0xff]  }
 0x132   :  { %v5413_v25 = vld [vmem:[%s7011_s0 + $0x908] ss:$12 sps:$4 sm:$0xff]  }
 0x133   :  { %2819 = vmatpush2.bf16.msra.mxu0 %v5363_v26  ;;  %v5418_v26 = vld [vmem:[%s7011_s0 + $0xb2c] ss:$12 sps:$4 sm:$0xff]  }
 0x134   :  { %2417 = vmatpush2.bf16.msra.mxu1 %v5360_v28  ;;  %2820 = vmatprep.subr.bf16.mxu0 %v5371_v29  ;;  %v5416_v28 = vld [vmem:[%s7011_s0 + $0xb28] ss:$12 sps:$4 sm:$0xff]  }
 0x135   :  { %2418 = vmatprep.subr.bf16.mxu1 %v5368_v30  ;;  %v5421_v29 = vld [vmem:[%s7011_s0 + $0xb14] ss:$12 sps:$4 sm:$0xff]  }
 0x137   :  { %2821 = vmatpush2.bf16.msra.mxu0 %v5369_v31 }
 0x138   :  { %2419 = vmatpush2.bf16.msra.mxu1 %v5366_v32  ;;  %2822 = vmatprep.subr.bf16.mxu0 %v5377_v33  ;;  %v5419_v33 = vld [vmem:[%s7011_s0 + $0xb10] ss:$12 sps:$4 sm:$0xff]  }
 0x139   :  { %2420 = vmatprep.subr.bf16.mxu1 %v5374_v34 }
 0x13b   :  { %2823 = vmatpush2.bf16.msra.mxu0 %v5375_v35 }
 0x13c   :  { %2421 = vmatpush2.bf16.msra.mxu1 %v5372_v36  ;;  %2824 = vmatprep.subr.bf16.mxu0 %v5383_v37  ;;  %v5424_v36 = vld [vmem:[%s7011_s0 + $0xafc] ss:$12 sps:$4 sm:$0xff]  }
 0x13d   :  { %2422 = vmatprep.subr.bf16.mxu1 %v5380_v38 }
 0x13f   :  { %2825 = vmatpush2.bf16.msra.mxu0 %v5381_v39 }
 0x140   :  { %2423 = vmatpush2.bf16.msra.mxu1 %v5378_v40  ;;  %4920 = vmatprep.subr.bf16.mxu0 %v5386_v42 }
 0x141   :  { %4898 = vmatprep.subr.bf16.mxu1 %v5384_v43  ;;  %v5422_v43 = vld [vmem:[%s7011_s0 + $0xaf8] ss:$12 sps:$4 sm:$0xff]  }
 0x142   :  { %v1220_v49 = vpop.f32.mrf.mxu0  ;;  %2827 = vmatmul.mubr.bf16.vlgmr.msra.gmra.mxu0 %v5700_v44 }
 0x143   :  { %v4804_v50 = vpop.f32.mrf.mxu1  ;;  %v3289_v51 = vrot.slane %v1220_v49, 6  ;;  %2425 = vmatmul.mubr.bf16.vlgmr.msra.gmra.mxu1 %v5700_v44  ;;  %4921 = vmatpush3.bf16.msra.mxu0 %v5387_v45  ;;  %v5425_v49 = vld [vmem:[%s7011_s0 + $0xae0] ss:$12 sps:$4 sm:$0xff]  }
 0x144   :  { %4899 = vmatpush3.bf16.msra.mxu1 %v5385_v46  ;;  %v1222_v53 = vpop.f32.mrf.mxu0  ;;  %4922 = vmatprep.subr.bf16.mxu0 %v5390_v47  ;;  %v5427_v46 = vld [vmem:[%s7011_s0 + $0xae4] ss:$12 sps:$4 sm:$0xff]  }
 0x145   :  { %v6625_v56 = vsel %vm3344_vm1, %v6522_v13, %v3289_v51  ;;  %v4805_v57 = vpop.f32.mrf.mxu1  ;;  %v3290_v58 = vrot.slane %v1222_v53, 6  ;;  %4900 = vmatprep.subr.bf16.mxu1 %v5388_v48  ;;  %2867 = vmatprep.mubr.bf16.mxu1 %v5691_v41  ;;  %v5401_v13 = vld [vmem:[%s7011_s0 + $0x950] ss:$12 sps:$4 sm:$0xff]   ;;  %v5428_v51 = vld [vmem:[%s7011_s0 + $0xac8] ss:$12 sps:$4 sm:$0xff]  }
 0x146   :  { %v4806_v60 = vadd.f32 %v4805_v57, %v4804_v50  ;;  %v1224_v61 = vpop.f32.mrf.mxu0  ;;  %3269 = vmatprep.mubr.bf16.mxu0 %v5691_v41  ;;  %v5430_v50 = vld [vmem:[%s7011_s0 + $0xacc] ss:$12 sps:$4 sm:$0xff]   ;;  %v5431_v53 = vld [vmem:[%s7011_s0 + $0xab0] ss:$12 sps:$4 sm:$0xff]  }
 0x147   :  { %v6634_v62 = vsel %vm3344_vm1, %v6529_v17, %v3290_v58  ;;  %v4807_v0 = vpop.f32.mrf.mxu1  ;;  %4923 = vmatpush3.bf16.msra.mxu0 %v5391_v52  ;;  %v5405_v17 = vld [vmem:[%s7011_s0 + $0x938] ss:$12 sps:$4 sm:$0xff]   ;;  %v5433_v52 = vld [vmem:[%s7011_s0 + $0xab4] ss:$12 sps:$4 sm:$0xff]  }
 0x148   :  { %v3282_v2 = vrot.slane %v4806_v60, 7  ;;  %4901 = vmatpush3.bf16.msra.mxu1 %v5389_v54  ;;  %4924 = vmatprep.subr.bf16.mxu0 %v5394_v55  ;;  %v1225_v5 = vpop.f32.mrf.mxu0  ;;  %v5436_v54 = vld [vmem:[%s7011_s0 + $0xa9c] ss:$12 sps:$4 sm:$0xff]   ;;  %v5434_v55 = vld [vmem:[%s7011_s0 + $0xa98] ss:$12 sps:$4 sm:$0xff]  }
 0x149   :  { %v4808_v6 = vpop.f32.mrf.mxu1  ;;  %4902 = vmatprep.subr.bf16.mxu1 %v5392_v59  ;;  %v5439_v57 = vld [vmem:[%s7011_s0 + $0xa84] ss:$12 sps:$4 sm:$0xff]   ;;  %v5437_v58 = vld [vmem:[%s7011_s0 + $0xa80] ss:$12 sps:$4 sm:$0xff]   ;;  %v5440_v60 = vld [vmem:[%s7011_s0 + $0xbe8] ss:$12 sps:$4 sm:$0xff]  }
 0x14a   :  { %v6650_v8 = vsel %vm3340_vm0, %v6317_v63, %v3282_v2  ;;  %v5400_v63 = vld [vmem:[%s7011_s0 + $0xa10] ss:$12 sps:$4 sm:$0xff]   ;;  %v5442_v59 = vld [vmem:[%s7011_s0 + $0xbec] ss:$12 sps:$4 sm:$0xff]   ;;  %v5445_v61 = vld [vmem:[%s7011_s0 + $0xbd4] ss:$12 sps:$4 sm:$0xff]  }
 0x14b   :  { %4925 = vmatpush3.bf16.msra.mxu0 %v5395_v1  ;;  %v5443_v0 = vld [vmem:[%s7011_s0 + $0xbd0] ss:$12 sps:$4 sm:$0xff]   ;;  %v5446_v2 = vld [vmem:[%s7011_s0 + $0xbb8] ss:$12 sps:$4 sm:$0xff]   ;;  %v5452_v6 = vld [vmem:[%s7011_s0 + $0xb88] ss:$12 sps:$4 sm:$0xff]  }
 0x14c   :  { %4903 = vmatpush3.bf16.msra.mxu1 %v5393_v3  ;;  %4926 = vmatprep.subr.bf16.mxu0 %v5398_v4  ;;  %v5448_v1 = vld [vmem:[%s7011_s0 + $0xbbc] ss:$12 sps:$4 sm:$0xff]   ;;  %v5451_v3 = vld [vmem:[%s7011_s0 + $0xba4] ss:$12 sps:$4 sm:$0xff]   ;;  %v5449_v4 = vld [vmem:[%s7011_s0 + $0xba0] ss:$12 sps:$4 sm:$0xff]  }
 0x14d   :  { %4904 = vmatprep.subr.bf16.mxu1 %v5396_v7  ;;  %v5454_v5 = vld [vmem:[%s7011_s0 + $0xb8c] ss:$12 sps:$4 sm:$0xff]   ;;  %v5457_v7 = vld [vmem:[%s7011_s0 + $0xb74] ss:$12 sps:$4 sm:$0xff]  }
 0x14f   :  { %4927 = vmatpush3.bf16.msra.mxu0 %v5399_v9  ;;  %v5460_v9 = vld [vmem:[%s7011_s0 + $0xb5c] ss:$12 sps:$4 sm:$0xff]  }
 0x150   :  { %4905 = vmatpush3.bf16.msra.mxu1 %v5397_v10  ;;  %4928 = vmatprep.subr.bf16.mxu0 %v5402_v11  ;;  %v5458_v10 = vld [vmem:[%s7011_s0 + $0xb58] ss:$12 sps:$4 sm:$0xff]  }
 0x151   :  { %4906 = vmatprep.subr.bf16.mxu1 %v5400_v63  ;;  %v5463_v11 = vld [vmem:[%s7011_s0 + $0xb44] ss:$12 sps:$4 sm:$0xff]   ;;  %v5461_v63 = vld [vmem:[%s7011_s0 + $0xb40] ss:$12 sps:$4 sm:$0xff]  }
 0x153   :  { %4929 = vmatpush3.bf16.msra.mxu0 %v5403_v12 }
 0x154   :  { %4907 = vmatpush3.bf16.msra.mxu1 %v5401_v13  ;;  %4930 = vmatprep.subr.bf16.mxu0 %v5406_v14 }
 0x155   :  { %4908 = vmatprep.subr.bf16.mxu1 %v5404_v15 }
 0x157   :  { %4931 = vmatpush3.bf16.msra.mxu0 %v5407_v16 }
 0x158   :  { %4909 = vmatpush3.bf16.msra.mxu1 %v5405_v17  ;;  %4932 = vmatprep.subr.bf16.mxu0 %v5410_v18 }
 0x159   :  { %4910 = vmatprep.subr.bf16.mxu1 %v5408_v19 }
 0x15b   :  { %4933 = vmatpush3.bf16.msra.mxu0 %v5411_v20 }
 0x15c   :  { %4911 = vmatpush3.bf16.msra.mxu1 %v5409_v21  ;;  %4934 = vmatprep.subr.bf16.mxu0 %v5414_v22 }
 0x15d   :  { %4912 = vmatprep.subr.bf16.mxu1 %v5412_v23 }
 0x15f   :  { %4935 = vmatpush3.bf16.msra.mxu0 %v5415_v24 }
 0x160   :  { %4913 = vmatpush3.bf16.msra.mxu1 %v5413_v25 }
 0x161   :  { %3196 = vmatprep.subr.bf16.mxu1 %v5418_v26 }
 0x162   :  { %v4848_v30 = vpop.f32.mrf.mxu0  ;;  %3270 = vmatmul.mubr.bf16.vlgmr.msra.gmra.mxu0 %v5700_v44 }
 0x163   :  { %v4826_v31 = vpop.f32.mrf.mxu1  ;;  %2868 = vmatmul.mubr.bf16.vlgmr.msra.gmra.mxu1 %v5700_v44 }
 0x164   :  { %3197 = vmatpush1.bf16.msra.mxu1 %v5416_v28  ;;  %v4849_v32 = vpop.f32.mrf.mxu0  ;;  %3228 = vmatprep.mubr.bf16.mxu1 %v5691_v41 }
 0x165   :  { %v4827_v34 = vpop.f32.mrf.mxu1  ;;  %v4850_v35 = vadd.f32 %v4849_v32, %v4848_v30  ;;  %3198 = vmatprep.subr.bf16.mxu1 %v5421_v29 }
 0x166   :  { %v4828_v37 = vadd.f32 %v4827_v34, %v4826_v31  ;;  %v4851_v38 = vpop.f32.mrf.mxu0 }
 0x167   :  { %v3300_v39 = vrot.slane %v4850_v35, 5  ;;  %v4829_v40 = vpop.f32.mrf.mxu1 }
 0x168   :  { %v3291_v42 = vrot.slane %v4828_v37, 6  ;;  %3199 = vmatpush1.bf16.msra.mxu1 %v5419_v33  ;;  %v4852_v45 = vpop.f32.mrf.mxu0 }
 0x169   :  { %v4830_v41 = vpop.f32.mrf.mxu1  ;;  %3200 = vmatprep.subr.bf16.mxu1 %v5424_v36 }
 0x16a   :  { %v3347_v47 = vsel %vm3344_vm1, %v6650_v8, %v3291_v42  ;;  %v5455_v8 = vld [vmem:[%s7011_s0 + $0xb70] ss:$12 sps:$4 sm:$0xff]  }
 0x16b   :  { %v6733_v48 = vsel %vm3348_vm2, %v3347_v47, %v3300_v39 }
 0x16c   :  { %3201 = vmatpush1.bf16.msra.mxu1 %v5422_v43 }
 0x16d   :  { %3202 = vmatprep.subr.bf16.mxu1 %v5427_v46 }
 0x170   :  { %3203 = vmatpush1.bf16.msra.mxu1 %v5425_v49 }
 0x171   :  { %3204 = vmatprep.subr.bf16.mxu1 %v5430_v50 }
 0x174   :  { %3205 = vmatpush1.bf16.msra.mxu1 %v5428_v51 }
 0x175   :  { %3206 = vmatprep.subr.bf16.mxu1 %v5433_v52 }
 0x178   :  { %3207 = vmatpush1.bf16.msra.mxu1 %v5431_v53 }
 0x179   :  { %3208 = vmatprep.subr.bf16.mxu1 %v5436_v54 }
 0x17c   :  { %3209 = vmatpush1.bf16.msra.mxu1 %v5434_v55 }
 0x17d   :  { %3210 = vmatprep.subr.bf16.mxu1 %v5439_v57 }
 0x180   :  { %3211 = vmatpush1.bf16.msra.mxu1 %v5437_v58 }
 0x181   :  { %3212 = vmatprep.subr.bf16.mxu1 %v5442_v59 }
 0x184   :  { %3213 = vmatpush2.bf16.msra.mxu1 %v5440_v60 }
 0x185   :  { %3214 = vmatprep.subr.bf16.mxu1 %v5445_v61 }
 0x188   :  { %3215 = vmatpush2.bf16.msra.mxu1 %v5443_v0 }
 0x189   :  { %3216 = vmatprep.subr.bf16.mxu1 %v5448_v1 }
 0x18c   :  { %3217 = vmatpush2.bf16.msra.mxu1 %v5446_v2 }
 0x18d   :  { %3218 = vmatprep.subr.bf16.mxu1 %v5451_v3 }
 0x190   :  { %3219 = vmatpush2.bf16.msra.mxu1 %v5449_v4 }
 0x191   :  { %3220 = vmatprep.subr.bf16.mxu1 %v5454_v5 }
 0x194   :  { %3221 = vmatpush2.bf16.msra.mxu1 %v5452_v6 }
 0x195   :  { %3222 = vmatprep.subr.bf16.mxu1 %v5457_v7 }
 0x198   :  { %3223 = vmatpush2.bf16.msra.mxu1 %v5455_v8 }
 0x199   :  { %3224 = vmatprep.subr.bf16.mxu1 %v5460_v9 }
 0x19c   :  { %3225 = vmatpush2.bf16.msra.mxu1 %v5458_v10 }
 0x19d   :  { %3226 = vmatprep.subr.bf16.mxu1 %v5463_v11 }
 0x1a0   :  { %3227 = vmatpush2.bf16.msra.mxu1 %v5461_v63 }
 0x1a2   :  { %v2024_v12 = vpop.f32.mrf.mxu0 }
 0x1a3   :  { %v1622_v13 = vpop.f32.mrf.mxu1  ;;  %3229 = vmatmul.mubr.bf16.vlgmr.msra.gmra.mxu1 %v5700_v44  ;;  %v3307_v14 = vrot.slane %v2024_v12, 4 }
 0x1a4   :  { %v3298_v15 = vrot.slane %v1622_v13, 5  ;;  %v2026_v16 = vpop.f32.mrf.mxu0 }
 0x1a5   :  { %v1624_v17 = vpop.f32.mrf.mxu1  ;;  %v3308_v18 = vrot.slane %v2026_v16, 4 }
 0x1a6   :  { %v3349_v19 = vsel %vm3348_vm2, %v6625_v56, %v3298_v15  ;;  %v3299_v20 = vrot.slane %v1624_v17, 5  ;;  %v2028_v21 = vpop.f32.mrf.mxu0 }
 0x1a7   :  { %v3353_v22 = vsel %vm3352_vm3, %v3349_v19, %v3307_v14  ;;  %v1626_v23 = vpop.f32.mrf.mxu1 }
 0x1a8   :  { %v3350_v24 = vsel %vm3348_vm2, %v6634_v62, %v3299_v20  ;;  %v2029_v25 = vpop.f32.mrf.mxu0 }
 0x1a9   :  { %v3354_v44 = vsel %vm3352_vm3, %v3350_v24, %v3308_v18  ;;  %v1627_v26 = vpop.f32.mrf.mxu1 }
 0x1aa   :  { %v5539_v26 = vmov 0  }
 0x1ab   :  { %4950 = vset.pattern.permute.xlu1 %v5539_v26  ;;  %3840 = vmatprep.mubr.bf16.mxu1 %v5539_v26 }
 0x1ac   :  { %4951 = vset.pattern.permute.xlu0 %v5539_v26 }
 0x1c2   :  { %v4892_v28 = vpop.f32.mrf.mxu0 }
 0x1c3   :  { %v4870_v29 = vpop.f32.mrf.mxu1 }
 0x1c4   :  { %v4893_v30 = vpop.f32.mrf.mxu0 }
 0x1c5   :  { %v4871_v31 = vpop.f32.mrf.mxu1  ;;  %v4894_v32 = vadd.f32 %v4893_v30, %v4892_v28  ;;  %v13_v28 = vstv %s7013_s2  ;;  %v5464_v30 = vld [vmem:[%s7015_s4 + $0x70] ss:$8 sps:$4 sm:$0xff]  }
 0x1c6   :  { %v4872_v33 = vadd.f32 %v4871_v31, %v4870_v29  ;;  %v4895_v34 = vpop.f32.mrf.mxu0  ;;  %14 = vst [vmem:[#allocation5] sm:$0x1] %v13_v28  ;;  %v15_v29 = vstv %s7014_s3  ;;  %v5466_v31 = vld [vmem:[%s7015_s4 + $0x74] ss:$8 sps:$4 sm:$0xff]  }
 0x1c7   :  { %v3318_v56 = vrot.slane %v4894_v32, 3  ;;  %v4873_v35 = vpop.f32.mrf.mxu1  ;;  %16 = vst [vmem:[#allocation6] sm:$0x1] %v15_v29  ;;  %v5469_v32 = vld [vmem:[%s7015_s4 + $0x64] ss:$8 sps:$4 sm:$0xff]   ;;  %3767 = vmatprep.subr.bf16.mxu0 %v5466_v31 }
 0x1c8   :  { %v3309_v36 = vrot.slane %v4872_v33, 4  ;;  %v4896_v37 = vpop.f32.mrf.mxu0  ;;  %3768 = vmatpush1.bf16.msra.mxu0 %v5464_v30  ;;  %v5467_v33 = vld [vmem:[%s7015_s4 + $0x60] ss:$8 sps:$4 sm:$0xff]   ;;  %v5472_v34 = vld [vmem:[%s7015_s4 + $0x54] ss:$8 sps:$4 sm:$0xff]   ;;  %v5540_v35 = vmov 65535  }
 0x1c9   :  { %v4874_v38 = vpop.f32.mrf.mxu1  ;;  %3769 = vmatprep.subr.bf16.mxu0 %v5469_v32  ;;  %v5475_v37 = vld [vmem:[%s7015_s4 + $0x44] ss:$8 sps:$4 sm:$0xff]  }
 0x1ca   :  { %v3355_v62 = vsel %vm3352_vm3, %v6733_v48, %v3309_v36  ;;  %v3759_v36 = vsel %vm3352_vm3, 4294967295, %v5540_v35  ;;  %v5473_v38 = vld [vmem:[%s7015_s4 + $0x40] ss:$8 sps:$4 sm:$0xff]  }
 0x1cb   :  { %v3359_v39 = vsel %vm3356_vm4, %v3355_v62, %v3318_v56  ;;  %v5470_v56 = vld [vmem:[%s7015_s4 + $0x50] ss:$8 sps:$4 sm:$0xff]   ;;  %v5478_v62 = vld [vmem:[%s7015_s4 + $0x34] ss:$8 sps:$4 sm:$0xff]  }
 0x1cc   :  { %3770 = vmatpush1.bf16.msra.mxu0 %v5467_v33 }
 0x1cd   :  { %3771 = vmatprep.subr.bf16.mxu0 %v5472_v34 }
 0x1d0   :  { %3772 = vmatpush1.bf16.msra.mxu0 %v5470_v56 }
 0x1d1   :  { %3773 = vmatprep.subr.bf16.mxu0 %v5475_v37 }
 0x1d4   :  { %3774 = vmatpush1.bf16.msra.mxu0 %v5473_v38  ;;  %v3430_v38 = vld [vmem:[#allocation5] sm:$0x1] }
 0x1d5   :  { %3775 = vmatprep.subr.bf16.mxu0 %v5478_v62  ;;  %v6965_v62 = vsub.s32 0, %v5658_v27 }
 0x202   :  { %v2828_v40 = vpop.f32.mrf.mxu0 }
 0x203   :  { %v2426_v42 = vpop.f32.mrf.mxu1  ;;  %v3325_v43 = vrot.slane %v2828_v40, 2  ;;  %v5491_v40 = vld [vmem:[%s7015_s4 + $0x160] ss:$8 sps:$4 sm:$0x1f]  }
 0x204   :  { %v3316_v45 = vrot.slane %v2426_v42, 3  ;;  %v2830_v41 = vpop.f32.mrf.mxu0  ;;  %v5493_v42 = vld [vmem:[%s7015_s4 + $0x164] ss:$8 sps:$4 sm:$0x1f]  }
 0x205   :  { %v2428_v46 = vpop.f32.mrf.mxu1  ;;  %v3326_v47 = vrot.slane %v2830_v41, 2  ;;  %v5499_v41 = vld [vmem:[%s7015_s4 + $0x154] ss:$8 sps:$4 sm:$0xff]  }
 0x206   :  { %v3357_v49 = vsel %vm3356_vm4, %v3353_v22, %v3316_v45  ;;  %v3317_v50 = vrot.slane %v2428_v46, 3  ;;  %v2832_v51 = vpop.f32.mrf.mxu0  ;;  %v5476_v46 = vld [vmem:[%s7015_s4 + $0x30] ss:$8 sps:$4 sm:$0xff]  }
 0x207   :  { %v3361_v52 = vsel %vm3360_vm5, %v3357_v49, %v3325_v43  ;;  %v2430_v53 = vpop.f32.mrf.mxu1  ;;  %v5497_v49 = vld [vmem:[%s7015_s4 + $0x150] ss:$8 sps:$4 sm:$0xff]   ;;  %3776 = vmatpush1.bf16.msra.mxu0 %v5476_v46  ;;  %v5479_v51 = vld [vmem:[%s7015_s4 + $0x20] ss:$8 sps:$4 sm:$0xff]   ;;  %v5526_v46 = vld [vmem:[%s7015_s4 + $0x94] ss:$8 sps:$4 sm:$0xff]  }
 0x208   :  { %v3358_v54 = vsel %vm3356_vm4, %v3354_v44, %v3317_v50  ;;  %v2833_v48 = vpop.f32.mrf.mxu0  ;;  %v5538_v44 = vmov 0.0   ;;  %v5505_v50 = vld [vmem:[%s7015_s4 + $0x144] ss:$8 sps:$4 sm:$0xff]   ;;  %v5484_v53 = vld [vmem:[%s7015_s4 + $0x14] ss:$8 sps:$4 sm:$0xff]  }
 0x209   :  { %v3362_v55 = vsel %vm3360_vm5, %v3358_v54, %v3326_v47  ;;  %v2431_v57 = vpop.f32.mrf.mxu1  ;;  %3383 = vst.msk [vmem:[#allocation3] sm:$0x1] %vm3382_vm8, %v5538_v44  ;;  %3384 = vst.msk [vmem:[#allocation4] sm:$0x1] %vm3382_vm8, %v5538_v44  ;;  %v5481_v47 = vld [vmem:[%s7015_s4 + $0x24] ss:$8 sps:$4 sm:$0xff]  }
 0x20a   :  { %3777 = vmatprep.subr.bf16.mxu0 %v5481_v47  ;;  %v5482_v48 = vld [vmem:[%s7015_s4 + $0x10] ss:$8 sps:$4 sm:$0xff]   ;;  %v5487_v57 = vld [vmem:[%s7015_s4 + $0x4] ss:$8 sps:$4 sm:$0xff]  }
 0x20b   :  { %3778 = vmatpush1.bf16.msra.mxu0 %v5479_v51  ;;  %v5529_v51 = vld [vmem:[%s7015_s4 + $0x104] ss:$8 sps:$4 sm:$0xff]  }
 0x20c   :  { %3779 = vmatprep.subr.bf16.mxu0 %v5484_v53  ;;  %v5532_v53 = vld [vmem:[%s7015_s4 + $0x84] ss:$8 sps:$4 sm:$0xff]  }
 0x20f   :  { %3780 = vmatpush1.bf16.msra.mxu0 %v5482_v48  ;;  %v5530_v48 = vld [vmem:[%s7015_s4 + $0x80] ss:$8 sps:$4 sm:$0xff]  }
 0x210   :  { %3781 = vmatprep.subr.bf16.mxu0 %v5487_v57  ;;  %v3385_v44 = vld [vmem:[#allocation3] sm:$0x1]  ;;  %v3402_v29 = vld [vmem:[#allocation4] sm:$0x1] }
 0x222   :  { %v4936_v58 = vpop.f32.mrf.mxu0 }
 0x223   :  { %v4914_v59 = vpop.f32.mrf.mxu1 }
 0x224   :  { %v4937_v60 = vpop.f32.mrf.mxu0 }
 0x225   :  { %v4915_v61 = vpop.f32.mrf.mxu1  ;;  %v4938_v0 = vadd.f32 %v4937_v60, %v4936_v58  ;;  %v5511_v58 = vld [vmem:[%s7015_s4 + $0x134] ss:$8 sps:$4 sm:$0xff]   ;;  %v5509_v60 = vld [vmem:[%s7015_s4 + $0x130] ss:$8 sps:$4 sm:$0xff]  }
 0x226   :  { %v4916_v1 = vadd.f32 %v4915_v61, %v4914_v59  ;;  %v4939_v2 = vpop.f32.mrf.mxu0 }
 0x227   :  { %v3336_v3 = vrot.slane %v4938_v0, 1  ;;  %v4917_v4 = vpop.f32.mrf.mxu1  ;;  %v5517_v0 = vld [vmem:[%s7015_s4 + $0x124] ss:$8 sps:$4 sm:$0xff]  }
 0x228   :  { %v3327_v5 = vrot.slane %v4916_v1, 2  ;;  %v4940_v6 = vpop.f32.mrf.mxu0 }
 0x229   :  { %v4918_v7 = vpop.f32.mrf.mxu1  ;;  %v5490_v6 = vld [vmem:[%s7015_s4 + $0xf4] ss:$8 sps:$4 sm:$0xff]  }
 0x22a   :  { %v3363_v8 = vsel %vm3360_vm5, %v3359_v39, %v3327_v5  ;;  %v3760_v39 = vsel %vm3356_vm4, %v3759_v36, 0  ;;  %v5485_v5 = vld [vmem:[%s7015_s4] ss:$8 sps:$4 sm:$0xff]  }
 0x22b   :  { %v3367_v9 = vsel %vm3364_vm6, %v3363_v8, %v3336_v3  ;;  %v3762_v43 = vand.u32 %v5491_v40, %v3760_v39  ;;  %v3765_v45 = vand.u32 %v5493_v42, %v3760_v39  ;;  %3782 = vmatpush1.bf16.msra.mxu0 %v5485_v5  ;;  %v5521_v42 = vld [vmem:[%s7015_s4 + $0x110] ss:$8 sps:$4 sm:$0xff]  }
 0x22c   :  { %3377 = vst.msk [vmem:[#allocation2 + $0x10] sm:$0xff] %vm3376_vm7, %v3367_v9  ;;  %v3387_v20 = vsel %vm3376_vm7, %v3367_v9, 0.0  ;;  %v3405_v21 = vmul.f32 %v3367_v9, %v3367_v9  ;;  %v5515_v9 = vld [vmem:[%s7015_s4 + $0x120] ss:$8 sps:$4 sm:$0xff]   ;;  %3783 = vmatprep.subr.bf16.mxu0 %v5490_v6 }
 0x22d   :  { %3810 = vmatprep.subr.bf16.mxu1 %v3765_v45  ;;  %v5524_v45 = vld [vmem:[%s7015_s4 + $0x90] ss:$8 sps:$4 sm:$0xff]  }
 0x22e   :  { %v3407_v24 = vsel %vm3376_vm7, %v3405_v21, 0.0  ;;  %3811 = vmatpush1.bf16.msra.mxu1 %v3762_v43  ;;  %v5506_v21 = vld [vmem:[%s7015_s4 + $0xc0] ss:$8 sps:$4 sm:$0xff]   ;;  %v5523_v43 = vld [vmem:[%s7015_s4 + $0x114] ss:$8 sps:$4 sm:$0xff]  }
 0x22f   :  { %3812 = vmatprep.subr.bf16.mxu1 %v5499_v41  ;;  %v3434_v41 = vld [vmem:[#allocation6] sm:$0x1] }
 0x232   :  { %3813 = vmatpush1.bf16.msra.mxu1 %v5497_v49 }
 0x233   :  { %3814 = vmatprep.subr.bf16.mxu1 %v5505_v50  ;;  %v3439_v57 = vld [vmem:[#allocation2 + $0x10] sm:$0xff] }
 0x263   :  { %v3230_v10 = vpop.f32.mrf.mxu1 }
 0x264   :  { %v3334_v11 = vrot.slane %v3230_v10, 1 }
 0x265   :  { %v3232_v63 = vpop.f32.mrf.mxu1 }
 0x266   :  { %v3335_v12 = vrot.slane %v3232_v63, 1  ;;  %v6826_v13 = vsel %vm3364_vm6, %v3361_v52, %v3334_v11  ;;  %v5488_v63 = vld [vmem:[%s7015_s4 + $0xf0] ss:$8 sps:$4 sm:$0xff]  }
 0x267   :  { %v3234_v14 = vpop.f32.mrf.mxu1  ;;  %v3403_v18 = vmul.f32 %v6826_v13, %v6826_v13  ;;  %3784 = vmatpush2.bf16.msra.mxu0 %v5488_v63 }
 0x268   :  { %v6828_v15 = vsel %vm3364_vm6, %v3362_v55, %v3335_v12  ;;  %v5503_v55 = vld [vmem:[%s7015_s4 + $0x140] ss:$8 sps:$4 sm:$0xff]   ;;  %v5496_v12 = vld [vmem:[%s7015_s4 + $0xe4] ss:$8 sps:$4 sm:$0xff]  }
 0x269   :  { %v3235_v16 = vpop.f32.mrf.mxu1  ;;  %v3386_v17 = vadd.f32 %v6828_v15, %v6826_v13  ;;  %v3404_v19 = vmul.f32 %v6828_v15, %v6828_v15  ;;  %3815 = vmatpush1.bf16.msra.mxu1 %v5503_v55  ;;  %3785 = vmatprep.subr.bf16.mxu0 %v5496_v12 }
 0x26a   :  { %3816 = vmatprep.subr.bf16.mxu1 %v5511_v58 }
 0x26b   :  { %v3388_v22 = vadd.f32 %v3387_v20, %v3386_v17  ;;  %v3406_v23 = vadd.f32 %v3404_v19, %v3403_v18  ;;  %v5494_v17 = vld [vmem:[%s7015_s4 + $0xe0] ss:$8 sps:$4 sm:$0xff]   ;;  %v5502_v18 = vld [vmem:[%s7015_s4 + $0xd4] ss:$8 sps:$4 sm:$0xff]   ;;  %v5500_v19 = vld [vmem:[%s7015_s4 + $0xd0] ss:$8 sps:$4 sm:$0xff]  }
 0x26c   :  { %3786 = vmatpush2.bf16.msra.mxu0 %v5494_v17  ;;  %v5508_v20 = vld [vmem:[%s7015_s4 + $0xc4] ss:$8 sps:$4 sm:$0xff]  }
 0x26d   :  { %3389 = vadd.xlane.f32.xlu0 %v3388_v22  ;;  %v3408_v25 = vadd.f32 %v3407_v24, %v3406_v23  ;;  %3817 = vmatpush1.bf16.msra.mxu1 %v5509_v60  ;;  %v5514_v22 = vld [vmem:[%s7015_s4 + $0xb4] ss:$8 sps:$4 sm:$0xff]   ;;  %v5512_v23 = vld [vmem:[%s7015_s4 + $0xb0] ss:$8 sps:$4 sm:$0xff]   ;;  %v5520_v24 = vld [vmem:[%s7015_s4 + $0xa4] ss:$8 sps:$4 sm:$0xff]  }
 0x26e   :  { %3818 = vmatprep.subr.bf16.mxu1 %v5517_v0  ;;  %3787 = vmatprep.subr.bf16.mxu0 %v5502_v18  ;;  %v3851_v18 = vld [vmem:[%s7018_s6] sm:$0x3] }
 0x270   :  { %3788 = vmatpush2.bf16.msra.mxu0 %v5500_v19 }
 0x271   :  { %3409 = vadd.xlane.f32.xlu0 %v3408_v25  ;;  %3819 = vmatpush1.bf16.msra.mxu1 %v5515_v9  ;;  %v5518_v25 = vld [vmem:[%s7015_s4 + $0xa0] ss:$8 sps:$4 sm:$0xff]   ;;  %v3524_v9 = vsub.s32 1, %v5658_v27  ;;  %v3856_v27 = vrot.slane %v3851_v18, %v6965_v62 }
 0x272   :  { %3789 = vmatprep.subr.bf16.mxu0 %v5508_v20  ;;  %3820 = vmatprep.subr.bf16.mxu1 %v5523_v43 }
 0x274   :  { %3790 = vmatpush2.bf16.msra.mxu0 %v5506_v21 }
 0x275   :  { %3791 = vmatprep.subr.bf16.mxu0 %v5514_v22  ;;  %3821 = vmatpush1.bf16.msra.mxu1 %v5521_v42 }
 0x276   :  { %3822 = vmatprep.subr.bf16.mxu1 %v5529_v51 }
 0x278   :  { %3792 = vmatpush2.bf16.msra.mxu0 %v5512_v23 }
 0x279   :  { %3793 = vmatprep.subr.bf16.mxu0 %v5520_v24 }
 0x27c   :  { %3794 = vmatpush2.bf16.msra.mxu0 %v5518_v25 }
 0x27d   :  { %3795 = vmatprep.subr.bf16.mxu0 %v5526_v46 }
 0x280   :  { %3796 = vmatpush2.bf16.msra.mxu0 %v5524_v45 }
 0x281   :  { %3797 = vmatprep.subr.bf16.mxu0 %v5532_v53 }
 0x284   :  { %3798 = vmatpush2.bf16.msra.mxu0 %v5530_v48 }
 0x2f6   :  { %v3390_v52 = vpop.xlane.xlu0 %3389 }
 0x2f7   :  { %v3391_v54 = vrot.slane %v3390_v52, 4 }
 0x2f9   :  { %v3392_v59 = vadd.f32 %v3391_v54, %v3390_v52  ;;  %v5527_v52 = vld [vmem:[%s7015_s4 + $0x100] ss:$8 sps:$4 sm:$0xff]  }
 0x2fa   :  { %v3410_v61 = vpop.xlane.xlu0 %3409  ;;  %3823 = vmatpush1.bf16.msra.mxu1 %v5527_v52 }
 0x2fb   :  { %v3393_v1 = vrot.slane %v3392_v59, 2  ;;  %v3411_v2 = vrot.slane %v3410_v61, 4 }
 0x2fd   :  { %v3412_v3 = vadd.f32 %v3411_v2, %v3410_v61  ;;  %v3394_v4 = vadd.f32 %v3393_v1, %v3392_v59 }
 0x2ff   :  { %v3413_v7 = vrot.slane %v3412_v3, 2  ;;  %v3395_v8 = vrot.slane %v3394_v4, 1 }
 0x301   :  { %v3396_v10 = vadd.f32 %v3395_v8, %v3394_v4  ;;  %v3414_v11 = vadd.f32 %v3413_v7, %v3412_v3 }
 0x303   :  { %4942 = vpush %v3396_v10  ;;  %v3415_v14 = vrot.slane %v3414_v11, 1 }
 0x305   :  { %v3416_v16 = vadd.f32 %v3415_v14, %v3414_v11 }
 0x307   :  { %4944 = vpush %v3416_v16 }
 0x334   :  { %s4943_s19 = spop %4942 }
 0x335   :  { %v3398_v26 = vstv %s4943_s19 }
 0x336   :  { %v3399_v28 = vadd.f32 %v3398_v26, %v3385_v44  ;;  %v3860_v44 = vrot.slane %v3851_v18, %v3524_v9 }
 0x338   :  { %3401 = vst.msk [vmem:[#allocation3] sm:$0x1] %vm3382_vm8, %v3399_v28  ;;  %s4945_s20 = spop %4944 }
 0x339   :  { %v3418_v30 = vstv %s4945_s20 }
 0x33a   :  { %v3419_v31 = vadd.f32 %v3418_v30, %v3402_v29 }
 0x33c   :  { %3420 = vst.msk [vmem:[#allocation4] sm:$0x1] %vm3382_vm8, %v3419_v31 }
 0x33f   :  { %v3424_v32 = vld [vmem:[#allocation3] sm:$0x1] }
 0x340   :  { %v3425_v33 = vmul.f32 0.0013850415, %v3424_v32 }
 0x342   :  { %v3428_v35 = vmul.f32 %v3425_v33, %v3425_v33 }
 0x343   :  { %v3426_v34 = vld [vmem:[#allocation4] sm:$0x1] }
 0x344   :  { %v3427_v56 = vmul.f32 0.0013850415, %v3426_v34 }
 0x346   :  { %v3429_v36 = vsub.f32 %v3427_v56, %v3428_v35 }
 0x348   :  { %v3431_v37 = vadd.f32 1e-05, %v3429_v36 }
 0x34a   :  { %5533 = vrsqrt.f32 %v3431_v37 }
 0x357   :  { %v5534_v39 = vpop.eup %5533 }
 0x358   :  { %v3433_v40 = vmul.f32 %v5534_v39, %v3430_v38 }
 0x35a   :  { %v3444_v47 = vrot.slane %v3433_v40, %v6965_v62  ;;  %v3435_v49 = vmul.f32 %v3433_v40, %v3425_v33 }
 0x35c   :  { %3446 = vperm.xlu1 %4950, %v3444_v47   ;;  %v3436_v50 = vsub.f32 %v3434_v41, %v3435_v49 }
 0x35e   :  { %v3456_v54 = vrot.slane %v3436_v50, %v6965_v62 }
 0x360   :  { %3458 = vperm.xlu1 %4950, %v3456_v54  }
 0x3d7   :  { %v3447_v55 = vpop.permute.xlu1 %3446 }
 0x3d8   :  { %v3449_v58 = vmul.f32 %v3447_v55, %v6826_v13  ;;  %v3450_v59 = vmul.f32 %v3447_v55, %v6828_v15  ;;  %v3451_v60 = vmul.f32 %v3447_v55, %v3439_v57  ;;  %v17_v13 = vstv %s7016_s7  ;;  %v3516_v15 = vld [vmem:[%s7017_s5] sm:$0x3] }
 0x3d9   :  { %18 = vst [vmem:[#allocation7] sm:$0x1] %v17_v13  ;;  %v3521_v10 = vrot.slane %v3516_v15, %v6965_v62  ;;  %v3525_v63 = vrot.slane %v3516_v15, %v3524_v9 }
 0x3db   :  { %v3459_v61 = vpop.permute.xlu1 %3458 }
 0x3dc   :  { %v3461_v0 = vadd.f32 %v3459_v61, %v3449_v58  ;;  %v3462_v1 = vadd.f32 %v3459_v61, %v3450_v59  ;;  %v3463_v2 = vadd.f32 %v3459_v61, %v3451_v60 }
 0x3de   :  { %v3464_v3 = vmax.f32 %v3461_v0, 0.0  ;;  %v3465_v4 = vmax.f32 %v3462_v1, 0.0  ;;  %v3466_v5 = vmax.f32 %v3463_v2, 0.0 }
 0x3e0   :  { %v3467_v6 = vpack.c.bf16 %v3464_v3, %v3464_v3  ;;  %v3468_v7 = vpack.c.bf16 %v3465_v4, %v3465_v4  ;;  %v3469_v8 = vpack.c.bf16 %v3466_v5, %v3466_v5  ;;  %v4765_v32 = vld [vmem:[#allocation7] ss:$0 sm:$0xff] }
 0x3e2   :  { %3799 = vmatprep.mubr.bf16.mxu0 %v3468_v7  ;;  %4764 = vmatmul.mubr.msk.bf16.vlgmr.msra.gmra.mxu1 %vm3376_vm7, %v3469_v8 }
 0x3e3   :  { %3800 = vmatmul.mubr.bf16.vlgmr.msra.gmra.mxu0 %v3467_v6 }
 0x4a2   :  { %v3842_v11 = vpop.f32.mrf.mxu1 }
 0x4a3   :  { %v3801_v12 = vpop.f32.mrf.mxu0 }
 0x4a4   :  { %v3802_v14 = vadd.f32 %v3801_v12, %v3521_v10  ;;  %v3844_v16 = vpop.f32.mrf.mxu1 }
 0x4a5   :  { %v3803_v17 = vpop.f32.mrf.mxu0 }
 0x4a6   :  { %v3843_v19 = vadd.f32 %v3842_v11, %v3802_v14  ;;  %v3804_v20 = vadd.f32 %v3803_v17, %v3525_v63  ;;  %v3846_v21 = vpop.f32.mrf.mxu1 }
 0x4a7   :  { %v3805_v22 = vpop.f32.mrf.mxu0 }
 0x4a8   :  { %v3849_v23 = vmax.f32 %v3843_v19, 0.0  ;;  %v3845_v24 = vadd.f32 %v3844_v16, %v3804_v20  ;;  %v3847_v25 = vpop.f32.mrf.mxu1 }
 0x4a9   :  { %v3806_v26 = vpop.f32.mrf.mxu0 }
 0x4aa   :  { %v3850_v28 = vmax.f32 %v3845_v24, 0.0  ;;  %v3863_v29 = vmul.f32 %v3856_v27, %v3849_v23 }
 0x4ac   :  { %v3864_v30 = vmul.f32 %v3860_v44, %v3850_v28 }
 0x4ae   :  { %v3865_v31 = vadd.f32 %v3864_v30, %v3863_v29 }
 0x4b0   :  { %3866 = vadd.xlane.f32.xlu0 %v3865_v31 }
 0x539   :  { %v3867_v33 = vpop.xlane.xlu0 %3866 }
 0x53a   :  { %v3875_v34 = vadd.f32 %v4765_v32, %v3867_v33 }
 0x53c   :  { %5535 = vtanh.f32 %v3875_v34 }
 0x549   :  { %v5536_v56 = vpop.eup %5535 }
 0x54a   :  { %3878 = vst.msk [vmem:[%s7019_s8] sm:$0xff] %vm3877_vm9, %v5536_v56 }

</bundles_post_ra>
